<compile_context>
chip_gen: v6e
topology: v6e:2x2x1
jax: 0.10.0
libtpu: 0.0.40
codegen_flags: <defaults>
</compile_context>

<pallas_src>
import functools

import jax
import jax.numpy as jnp
from jax.experimental import pallas as pl
from jax.experimental.pallas import tpu as pltpu

EPS = 1e-5          # GraphNorm eps
NEG_SLOPE = 0.1     # F.leaky_relu(..., negative_slope=0.1)
K_CHEB = 4          # Chebyshev order
N_CONVS = 4         # convs1 has len(hidden_feats) == 4 entries


def _leaky_relu(x):
    return jnp.where(x > 0, x, NEG_SLOPE * x)


def _softplus(x):
    # matches torch.nn.functional.softplus (beta=1, threshold=20)
    return jnp.where(x > 20.0, x, jnp.log1p(jnp.exp(jnp.minimum(x, 20.0))))


def chebgcn1_kernel(x_ref, wc_ref, bc_ref, gnw_ref, gnb_ref, gnms_ref,
                    wl_ref, bl_ref, o_ref, *, n_nodes):
    _, R, GF = x_ref.shape          # R = n_super * n_nodes, GF = G * F (128)
    n_super = R // n_nodes

    x0 = x_ref[0]                                   # [R, GF] lane-packed slab

    # Row masks for the shifted powers of the chain scaled-Laplacian:
    #   (T^k h)[r] is nonzero only for k <= (r mod N) <= N-2.
    # Hoisted to full lane width once, before the unrolled layer loop.
    row = jax.lax.broadcasted_iota(jnp.int32, (R, GF), 0) % n_nodes
    upper = row <= n_nodes - 2
    m1 = jnp.where(jnp.logical_and(row >= 1, upper), 1.0, 0.0)
    m2 = jnp.where(jnp.logical_and(row >= 2, upper), 1.0, 0.0)
    m3 = jnp.where(jnp.logical_and(row >= 3, upper), 1.0, 0.0)

    def cheb_conv(h, layer):
        # Three independent masked shifts (s1 = -T h, s2 = T^2 h, s3 = -T^3 h);
        # the Chebyshev recurrence coefficients live in wc_ref (host-folded).
        s1 = m1 * pltpu.roll(h, 1, 0)
        s2 = m2 * pltpu.roll(h, 2, 0)
        s3 = m3 * pltpu.roll(h, 3, 0)
        cat = jnp.concatenate([h, s1, s2, s3], axis=-1)        # [R, 4*GF]
        out = jnp.dot(cat.astype(wc_ref.dtype), wc_ref[layer],
                      preferred_element_type=jnp.float32)
        return out + bc_ref[layer]

    def graph_norm(h, layer):
        # One-pass statistics per packed graph (node axis), variance formed
        # analytically from E[h], E[h^2] and the mean_scale.
        h3 = h.reshape(n_super, n_nodes, GF)
        mean = jnp.mean(h3, axis=1, keepdims=True)             # [S,1,GF]
        ex2 = jnp.mean(h3 * h3, axis=1, keepdims=True)         # [S,1,GF]
        s = gnms_ref[layer]                                     # [1,GF]
        var = jnp.maximum(ex2 - (2.0 * s - s * s) * (mean * mean), 0.0)
        inv = jax.lax.rsqrt(var + EPS)
        out3 = gnw_ref[layer] * (h3 - s * mean) * inv + gnb_ref[layer]
        return out3.reshape(R, GF)

    h = x0
    for layer in range(3):                          # convs1[0:3] / bns1[0:3]
        h = _leaky_relu(graph_norm(cheb_conv(h, layer), layer))

    h = cheb_conv(h, 3)                             # convs1[-1]
    h = x0 + graph_norm(h, 3)                       # residual with bns1[-1]
    h = jnp.maximum(h, 0.0)                         # relu

    pooled = jnp.mean(h.reshape(n_super, n_nodes, GF), axis=1)  # [S, GF]
    out = jnp.dot(pooled.astype(wl_ref.dtype), wl_ref[...],
                  preferred_element_type=jnp.float32) + bl_ref[...]
    o_ref[...] = _softplus(out).reshape(o_ref.shape)            # lane-dense


def chebgcn1_forward(feat, params, tb=None, use_bf16_matmul=False):
    """Fused ChebGCN1 forward.

    tb: graphs per grid step (rounded to a multiple of the lane-pack factor).
    use_bf16_matmul: pre-cast packed weights (and the in-kernel matmul LHS)
        to bf16 — a further MXU win on v6e/v7x; re-validate tolerances first.
    """
    B, N, F = feat.shape
    OUT = params["bl"].shape[-1]
    G = 128 // F if (F <= 128 and 128 % F == 0) else 1   # graphs per lane group
    GF = G * F
    wdtype = jnp.bfloat16 if use_bf16_matmul else jnp.float32

    # --- graphs per grid step: large to amortize the ~0.35us/step overhead
    #     and feed the MXU a tall M, but keep >= 2 grid steps when the batch
    #     allows so both v7x TensorCores get work from the parallel grid axis.
    if tb is None:
        tb = G if B <= 2 * G else min(128, pl.cdiv(B, 2))
    tb = pl.cdiv(max(G, min(tb, pl.cdiv(B, G) * G)), G) * G
    n_steps = pl.cdiv(B, tb)
    Bp = n_steps * tb
    S = tb // G                       # graph "super-rows" per step
    R = S * N                         # lane-packed node rows per step

    # --- pad & lane-pack features: graph (step, s, g) -> step, rows
    #     [s*N, (s+1)*N), lanes [g*F, (g+1)*F).  (Layout plumbing in XLA.)
    feat_p = feat.astype(jnp.float32)
    if Bp != B:
        feat_p = jnp.pad(feat_p, ((0, Bp - B), (0, 0), (0, 0)))
    feat_p = (feat_p.reshape(n_steps, S, G, N, F)
                    .transpose(0, 1, 3, 2, 4)
                    .reshape(n_steps, R, GF))

    # --- fold the Chebyshev recurrence of the chain Laplacian into the
    #     weights (out = h V0 + s1 V1 + s2 V2 + s3 V3 + b) and pack them
    #     block-diagonally over the G lane groups.
    wc = params["wc"].astype(jnp.float32)                       # [L, K, F, F]
    V = jnp.stack([wc[:, 0] - wc[:, 2],
                   3.0 * wc[:, 3] - wc[:, 1],
                   2.0 * wc[:, 2],
                   -4.0 * wc[:, 3]], axis=1)                    # [L, K, F, F]
    eye_g = jnp.eye(G, dtype=jnp.float32)
    wc_p = (jnp.einsum("gh,lkab->lkgahb", eye_g, V)
               .reshape(N_CONVS, K_CHEB * GF, GF).astype(wdtype))
    wl_p = (jnp.einsum("gh,ao->gaho", eye_g, params["wl"].astype(jnp.float32))
               .reshape(GF, G * OUT).astype(wdtype))
    bl_p = jnp.tile(params["bl"].astype(jnp.float32), (1, G))   # [1, G*OUT]

    def tile_g(p):                                              # [L,1,F]->[L,1,GF]
        return jnp.tile(p.astype(jnp.float32), (1, 1, G))

    bc_p, gnw_p, gnb_p, gnms_p = (tile_g(params[k])
                                  for k in ("bc", "gnw", "gnb", "gnms"))

    # --- advisory cost (param bytes counted ONCE; constant index maps mean
    #     they are DMA'd once, not per step).
    param_bytes = 4 * (wc_p.size + bc_p.size + gnw_p.size + gnb_p.size
                       + gnms_p.size + wl_p.size + bl_p.size)
    rows = (Bp // G) * N
    cost = pl.CostEstimate(
        flops=int(N_CONVS * 2 * rows * (K_CHEB * GF) * GF
                  + 2 * (Bp // G) * GF * (G * OUT)
                  + 24 * N_CONVS * rows * GF),
        transcendentals=int(N_CONVS * Bp * F + 2 * Bp * OUT),
        bytes_accessed=int(4 * feat_p.size + param_bytes + 4 * Bp * OUT),
    )

    # --- VMEM budget: double-buffered feature slab + in-flight intermediates
    #     (h, 3 masks, 3 shifts, the 4*GF cat, out) + resident packed params.
    feat_block = 4 * R * GF
    vmem_est = (2 + 14) * feat_block + param_bytes + (2 << 20)
    vmem_limit = None if vmem_est <= (16 << 20) else int(min(2 * vmem_est, 64 << 20))

    out_raw = pl.pallas_call(
        functools.partial(chebgcn1_kernel, n_nodes=N),
        out_shape=jax.ShapeDtypeStruct((n_steps, 1, tb * OUT), jnp.float32),
        grid=(n_steps,),
        in_specs=[
            pl.BlockSpec((1, R, GF), lambda g: (g, 0, 0)),                 # features
            pl.BlockSpec((N_CONVS, K_CHEB * GF, GF), lambda g: (0, 0, 0)),  # Cheb W
            pl.BlockSpec((N_CONVS, 1, GF), lambda g: (0, 0, 0)),           # Cheb bias
            pl.BlockSpec((N_CONVS, 1, GF), lambda g: (0, 0, 0)),           # GN weight
            pl.BlockSpec((N_CONVS, 1, GF), lambda g: (0, 0, 0)),           # GN bias
            pl.BlockSpec((N_CONVS, 1, GF), lambda g: (0, 0, 0)),           # GN mean_scale
            pl.BlockSpec((GF, G * OUT), lambda g: (0, 0)),                 # linear1 W
            pl.BlockSpec((1, G * OUT), lambda g: (0, 0)),                  # linear1 b
        ],
        out_specs=pl.BlockSpec((1, 1, tb * OUT), lambda g: (g, 0, 0)),     # lane-dense
        compiler_params=pltpu.CompilerParams(
            dimension_semantics=("parallel",),
            vmem_limit_bytes=vmem_limit),
        cost_estimate=cost,
    )(feat_p, wc_p, bc_p, gnw_p, gnb_p, gnms_p, wl_p, bl_p)

    return out_raw.reshape(n_steps, S, G, OUT).reshape(Bp, OUT)[:B]


# ------------------------- pure-JAX reference ------------------------------

def chain_cheb_operator(n_nodes: int) -> jax.Array:
    # PyG ChebConv (sym norm, lambda_max=2) of the directed chain i -> i+1:
    # T[i+1, i] = -1 for i < n_nodes - 2 (terminal node has zero out-degree,
    # so the last edge's normalized weight vanishes); diagonal is 0.
    idx = jnp.arange(n_nodes - 2)
    return jnp.zeros((n_nodes, n_nodes), jnp.float32).at[idx + 1, idx].set(-1.0)


def chebgcn1_reference(feat, params):
    B, N, F = feat.shape
    T = chain_cheb_operator(N)
    hi = jax.lax.Precision.HIGHEST
    wc, bc = params["wc"], params["bc"]

    def cheb(h, layer):
        tx0 = h
        tx1 = jnp.einsum("ij,bjf->bif", T, tx0, precision=hi)
        out = (jnp.matmul(tx0, wc[layer, 0], precision=hi)
               + jnp.matmul(tx1, wc[layer, 1], precision=hi))
        txp2, txp1 = tx0, tx1
        for k in range(2, K_CHEB):
            txk = 2.0 * jnp.einsum("ij,bjf->bif", T, txp1, precision=hi) - txp2
            out = out + jnp.matmul(txk, wc[layer, k], precision=hi)
            txp2, txp1 = txp1, txk
        return out + bc[layer]

    def gnorm(h, layer):
        mean = jnp.mean(h, axis=1, keepdims=True)
        c = h - mean * params["gnms"][layer]
        var = jnp.mean(c * c, axis=1, keepdims=True)
        return (params["gnw"][layer] * c * jax.lax.rsqrt(var + EPS)
                + params["gnb"][layer])

    h = feat
    for layer in range(3):
        h = _leaky_relu(gnorm(cheb(h, layer), layer))
    h = cheb(h, 3)
    h = feat + gnorm(h, 3)
    h = jnp.maximum(h, 0.0)
    pooled = jnp.mean(h, axis=1)
    return _softplus(jnp.matmul(pooled, params["wl"], precision=hi)
                     + params["bl"])


if __name__ == "__main__":
    key = jax.random.PRNGKey(0)
    B, N = 2, 16
    hidden_feats = [32, 32, 32, 32]   # 4 ChebConv layers, uniform width
    out_feats = 8
    F = hidden_feats[0]

    k_feat, k_wc, k_bc, k_wl, k_bl = jax.random.split(key, 5)
    feat = jax.random.normal(k_feat, (B, N, F), jnp.float32)

    params = dict(
        wc=jax.random.normal(k_wc, (N_CONVS, K_CHEB, F, F), jnp.float32) * 0.1,
        bc=jax.random.normal(k_bc, (N_CONVS, 1, F), jnp.float32) * 0.01,
        gnw=jnp.ones((N_CONVS, 1, F), jnp.float32),    # GraphNorm weight init 1
        gnb=jnp.zeros((N_CONVS, 1, F), jnp.float32),   # GraphNorm bias   init 0
        gnms=jnp.ones((N_CONVS, 1, F), jnp.float32),   # GraphNorm mean_scale 1
        wl=jax.random.normal(k_wl, (F, out_feats), jnp.float32) * 0.1,
        bl=jax.random.normal(k_bl, (1, out_feats), jnp.float32) * 0.01,
    )

    out = chebgcn1_forward(feat, params)
    jax.block_until_ready(out)
    assert out.shape == (B, out_feats)
    assert bool(jnp.all(jnp.isfinite(out)))

    ref = chebgcn1_reference(feat, params)
    assert bool(jnp.allclose(out, ref, rtol=1e-2, atol=1e-2)), (
        f"kernel/reference mismatch, max abs err "
        f"{float(jnp.max(jnp.abs(out - ref)))}")
    print("KERNEL_OK")
</pallas_src>

<mosaic_0001>
module attributes {stable_mosaic.version = 11 : i64} {
  func.func @chebgcn1_kernel(%arg0: i32, %arg1: memref<1x16x128xf32, #tpu.memory_space<vmem>>, %arg2: memref<4x512x128xf32, #tpu.memory_space<vmem>>, %arg3: memref<4x1x128xf32, #tpu.memory_space<vmem>>, %arg4: memref<4x1x128xf32, #tpu.memory_space<vmem>>, %arg5: memref<4x1x128xf32, #tpu.memory_space<vmem>>, %arg6: memref<4x1x128xf32, #tpu.memory_space<vmem>>, %arg7: memref<128x32xf32, #tpu.memory_space<vmem>>, %arg8: memref<1x32xf32, #tpu.memory_space<vmem>>, %arg9: memref<1x1x32xf32, #tpu.memory_space<vmem>>) attributes {dimension_semantics = [#tpu.dimension_semantics<parallel>], iteration_bounds = array<i64: 1>, scalar_prefetch = 0 : i64, scratch_operands = 0 : i64, tpu.core_type = #tpu.core_type<tc>, window_params = [{transform_indices = @transform_0, window_bounds = array<i64: 1, 16, 128>}, {pipeline_mode = #tpu.pipeline_mode<synchronous>, transform_indices = @transform_1, window_bounds = array<i64: 4, 512, 128>}, {pipeline_mode = #tpu.pipeline_mode<synchronous>, transform_indices = @transform_2, window_bounds = array<i64: 4, 1, 128>}, {pipeline_mode = #tpu.pipeline_mode<synchronous>, transform_indices = @transform_3, window_bounds = array<i64: 4, 1, 128>}, {pipeline_mode = #tpu.pipeline_mode<synchronous>, transform_indices = @transform_4, window_bounds = array<i64: 4, 1, 128>}, {pipeline_mode = #tpu.pipeline_mode<synchronous>, transform_indices = @transform_5, window_bounds = array<i64: 4, 1, 128>}, {pipeline_mode = #tpu.pipeline_mode<synchronous>, transform_indices = @transform_6, window_bounds = array<i64: 128, 32>}, {pipeline_mode = #tpu.pipeline_mode<synchronous>, transform_indices = @transform_7, window_bounds = array<i64: 1, 32>}, {transform_indices = @transform_8, window_bounds = array<i64: 1, 1, 32>}]} {
    %c0 = arith.constant 0 : index
    %c0_0 = arith.constant 0 : index
    %c0_1 = arith.constant 0 : index
    %0 = vector.load %arg1[%c0, %c0_0, %c0_1] : memref<1x16x128xf32, #tpu.memory_space<vmem>>, vector<1x16x128xf32>
    %1 = vector.shape_cast %0 : vector<1x16x128xf32> to vector<16x128xf32>
    %2 = tpu.iota {dimensions = array<i32: 0>} : vector<16x128xi32>
    %c16_i32 = arith.constant 16 : i32
    %c0_i32 = arith.constant 0 : i32
    %3 = arith.cmpi eq, %c16_i32, %c0_i32 : i32
    %c1_i32 = arith.constant 1 : i32
    %4 = arith.select %3, %c1_i32, %c16_i32 : i32
    %5 = vector.broadcast %4 : i32 to vector<16x128xi32>
    %6 = arith.remsi %2, %5 : vector<16x128xi32>
    %c0_i32_2 = arith.constant 0 : i32
    %7 = vector.broadcast %c0_i32_2 : i32 to vector<16x128xi32>
    %8 = arith.cmpi ne, %6, %7 : vector<16x128xi32>
    %c0_i32_3 = arith.constant 0 : i32
    %9 = vector.broadcast %c0_i32_3 : i32 to vector<16x128xi32>
    %10 = arith.cmpi slt, %6, %9 : vector<16x128xi32>
    %c0_i32_4 = arith.constant 0 : i32
    %11 = arith.cmpi slt, %4, %c0_i32_4 : i32
    %12 = vector.broadcast %11 : i1 to vector<16x128xi1>
    %13 = vector.broadcast %12 : vector<16x128xi1> to vector<16x128xi1>
    %14 = arith.xori %10, %13 : vector<16x128xi1>
    %15 = arith.andi %14, %8 : vector<16x128xi1>
    %16 = vector.broadcast %4 : i32 to vector<16x128xi32>
    %17 = arith.addi %6, %16 : vector<16x128xi32>
    %18 = arith.select %15, %17, %6 : vector<16x128xi1>, vector<16x128xi32>
    %c14_i32 = arith.constant 14 : i32
    %19 = vector.broadcast %c14_i32 : i32 to vector<16x128xi32>
    %20 = arith.cmpi sle, %18, %19 : vector<16x128xi32>
    %c1_i32_5 = arith.constant 1 : i32
    %21 = vector.broadcast %c1_i32_5 : i32 to vector<16x128xi32>
    %22 = arith.cmpi sge, %18, %21 : vector<16x128xi32>
    %23 = arith.andi %22, %20 : vector<16x128xi1>
    %cst = arith.constant 1.000000e+00 : f32
    %cst_6 = arith.constant 0.000000e+00 : f32
    %24 = vector.broadcast %cst : f32 to vector<16x128xf32>
    %25 = vector.broadcast %cst_6 : f32 to vector<16x128xf32>
    %26 = arith.select %23, %24, %25 : vector<16x128xi1>, vector<16x128xf32>
    %c2_i32 = arith.constant 2 : i32
    %27 = vector.broadcast %c2_i32 : i32 to vector<16x128xi32>
    %28 = arith.cmpi sge, %18, %27 : vector<16x128xi32>
    %29 = arith.andi %28, %20 : vector<16x128xi1>
    %cst_7 = arith.constant 1.000000e+00 : f32
    %cst_8 = arith.constant 0.000000e+00 : f32
    %30 = vector.broadcast %cst_7 : f32 to vector<16x128xf32>
    %31 = vector.broadcast %cst_8 : f32 to vector<16x128xf32>
    %32 = arith.select %29, %30, %31 : vector<16x128xi1>, vector<16x128xf32>
    %c3_i32 = arith.constant 3 : i32
    %33 = vector.broadcast %c3_i32 : i32 to vector<16x128xi32>
    %34 = arith.cmpi sge, %18, %33 : vector<16x128xi32>
    %35 = arith.andi %34, %20 : vector<16x128xi1>
    %cst_9 = arith.constant 1.000000e+00 : f32
    %cst_10 = arith.constant 0.000000e+00 : f32
    %36 = vector.broadcast %cst_9 : f32 to vector<16x128xf32>
    %37 = vector.broadcast %cst_10 : f32 to vector<16x128xf32>
    %38 = arith.select %35, %36, %37 : vector<16x128xi1>, vector<16x128xf32>
    %c1_i32_11 = arith.constant 1 : i32
    %39 = tpu.dynamic_rotate %1 by %c1_i32_11 dim 0 : vector<16x128xf32>, i32 -> vector<16x128xf32>
    %40 = arith.mulf %26, %39 : vector<16x128xf32>
    %c2_i32_12 = arith.constant 2 : i32
    %41 = tpu.dynamic_rotate %1 by %c2_i32_12 dim 0 : vector<16x128xf32>, i32 -> vector<16x128xf32>
    %42 = arith.mulf %32, %41 : vector<16x128xf32>
    %c3_i32_13 = arith.constant 3 : i32
    %43 = tpu.dynamic_rotate %1 by %c3_i32_13 dim 0 : vector<16x128xf32>, i32 -> vector<16x128xf32>
    %44 = arith.mulf %38, %43 : vector<16x128xf32>
    %45 = tpu.concatenate %1, %40, %42, %44 in 1 : vector<16x128xf32>, vector<16x128xf32>, vector<16x128xf32>, vector<16x128xf32> -> vector<16x512xf32>
    %c0_14 = arith.constant 0 : index
    %c0_15 = arith.constant 0 : index
    %c0_16 = arith.constant 0 : index
    %46 = vector.load %arg2[%c0_14, %c0_15, %c0_16] : memref<4x512x128xf32, #tpu.memory_space<vmem>>, vector<1x512x128xf32>
    %47 = vector.shape_cast %46 : vector<1x512x128xf32> to vector<512x128xf32>
    %cst_17 = arith.constant dense<0.000000e+00> : vector<16x128xf32>
    %48 = tpu.matmul %45, %47, %cst_17 {dimension_numbers = #tpu.dot_dimension_numbers<[1], [0], [0], [1], [0, 0, 1, 1], [], []>} : vector<16x512xf32>, vector<512x128xf32>, vector<16x128xf32> -> vector<16x128xf32>
    %c0_18 = arith.constant 0 : index
    %c0_19 = arith.constant 0 : index
    %c0_20 = arith.constant 0 : index
    %49 = vector.load %arg3[%c0_18, %c0_19, %c0_20] : memref<4x1x128xf32, #tpu.memory_space<vmem>>, vector<1x1x128xf32>
    %50 = vector.shape_cast %49 : vector<1x1x128xf32> to vector<1x128xf32>
    %51 = vector.broadcast %50 : vector<1x128xf32> to vector<16x128xf32>
    %52 = arith.addf %48, %51 : vector<16x128xf32>
    %53 = vector.shape_cast %52 : vector<16x128xf32> to vector<1x16x128xf32>
    %cst_21 = arith.constant dense<0.000000e+00> : vector<1x128xf32>
    %54 = vector.multi_reduction <add>, %53, %cst_21 [1] : vector<1x16x128xf32> to vector<1x128xf32>
    %55 = vector.shape_cast %54 : vector<1x128xf32> to vector<1x1x128xf32>
    %cst_22 = arith.constant 1.600000e+01 : f32
    %56 = vector.broadcast %cst_22 : f32 to vector<1x1x128xf32>
    %57 = arith.divf %55, %56 : vector<1x1x128xf32>
    %58 = arith.mulf %53, %53 : vector<1x16x128xf32>
    %cst_23 = arith.constant dense<0.000000e+00> : vector<1x128xf32>
    %59 = vector.multi_reduction <add>, %58, %cst_23 [1] : vector<1x16x128xf32> to vector<1x128xf32>
    %60 = vector.shape_cast %59 : vector<1x128xf32> to vector<1x1x128xf32>
    %cst_24 = arith.constant 1.600000e+01 : f32
    %61 = vector.broadcast %cst_24 : f32 to vector<1x1x128xf32>
    %62 = arith.divf %60, %61 : vector<1x1x128xf32>
    %c0_25 = arith.constant 0 : index
    %c0_26 = arith.constant 0 : index
    %c0_27 = arith.constant 0 : index
    %63 = vector.load %arg6[%c0_25, %c0_26, %c0_27] : memref<4x1x128xf32, #tpu.memory_space<vmem>>, vector<1x1x128xf32>
    %64 = vector.shape_cast %63 : vector<1x1x128xf32> to vector<1x128xf32>
    %cst_28 = arith.constant 2.000000e+00 : f32
    %65 = vector.broadcast %cst_28 : f32 to vector<1x128xf32>
    %66 = arith.mulf %65, %64 : vector<1x128xf32>
    %67 = arith.mulf %64, %64 : vector<1x128xf32>
    %68 = arith.subf %66, %67 : vector<1x128xf32>
    %69 = arith.mulf %57, %57 : vector<1x1x128xf32>
    %70 = vector.shape_cast %68 : vector<1x128xf32> to vector<1x1x128xf32>
    %71 = arith.mulf %70, %69 : vector<1x1x128xf32>
    %72 = arith.subf %62, %71 : vector<1x1x128xf32>
    %cst_29 = arith.constant 0.000000e+00 : f32
    %73 = vector.broadcast %cst_29 : f32 to vector<1x1x128xf32>
    %74 = arith.maximumf %72, %73 : vector<1x1x128xf32>
    %cst_30 = arith.constant 9.99999974E-6 : f32
    %75 = vector.broadcast %cst_30 : f32 to vector<1x1x128xf32>
    %76 = arith.addf %74, %75 : vector<1x1x128xf32>
    %77 = math.rsqrt %76 : vector<1x1x128xf32>
    %c0_31 = arith.constant 0 : index
    %c0_32 = arith.constant 0 : index
    %c0_33 = arith.constant 0 : index
    %78 = vector.load %arg4[%c0_31, %c0_32, %c0_33] : memref<4x1x128xf32, #tpu.memory_space<vmem>>, vector<1x1x128xf32>
    %79 = vector.shape_cast %78 : vector<1x1x128xf32> to vector<1x128xf32>
    %80 = vector.shape_cast %64 : vector<1x128xf32> to vector<1x1x128xf32>
    %81 = arith.mulf %80, %57 : vector<1x1x128xf32>
    %82 = vector.broadcast %81 : vector<1x1x128xf32> to vector<1x16x128xf32>
    %83 = arith.subf %53, %82 : vector<1x16x128xf32>
    %84 = vector.shape_cast %79 : vector<1x128xf32> to vector<1x1x128xf32>
    %85 = vector.broadcast %84 : vector<1x1x128xf32> to vector<1x16x128xf32>
    %86 = arith.mulf %85, %83 : vector<1x16x128xf32>
    %87 = vector.broadcast %77 : vector<1x1x128xf32> to vector<1x16x128xf32>
    %88 = arith.mulf %86, %87 : vector<1x16x128xf32>
    %c0_34 = arith.constant 0 : index
    %c0_35 = arith.constant 0 : index
    %c0_36 = arith.constant 0 : index
    %89 = vector.load %arg5[%c0_34, %c0_35, %c0_36] : memref<4x1x128xf32, #tpu.memory_space<vmem>>, vector<1x1x128xf32>
    %90 = vector.shape_cast %89 : vector<1x1x128xf32> to vector<1x128xf32>
    %91 = vector.shape_cast %90 : vector<1x128xf32> to vector<1x1x128xf32>
    %92 = vector.broadcast %91 : vector<1x1x128xf32> to vector<1x16x128xf32>
    %93 = arith.addf %88, %92 : vector<1x16x128xf32>
    %94 = vector.shape_cast %93 : vector<1x16x128xf32> to vector<16x128xf32>
    %cst_37 = arith.constant 0.000000e+00 : f32
    %95 = vector.broadcast %cst_37 : f32 to vector<16x128xf32>
    %96 = arith.cmpf ogt, %94, %95 : vector<16x128xf32>
    %cst_38 = arith.constant 1.000000e-01 : f32
    %97 = vector.broadcast %cst_38 : f32 to vector<16x128xf32>
    %98 = arith.mulf %97, %94 : vector<16x128xf32>
    %99 = arith.select %96, %94, %98 : vector<16x128xi1>, vector<16x128xf32>
    %c1_i32_39 = arith.constant 1 : i32
    %100 = tpu.dynamic_rotate %99 by %c1_i32_39 dim 0 : vector<16x128xf32>, i32 -> vector<16x128xf32>
    %101 = arith.mulf %26, %100 : vector<16x128xf32>
    %c2_i32_40 = arith.constant 2 : i32
    %102 = tpu.dynamic_rotate %99 by %c2_i32_40 dim 0 : vector<16x128xf32>, i32 -> vector<16x128xf32>
    %103 = arith.mulf %32, %102 : vector<16x128xf32>
    %c3_i32_41 = arith.constant 3 : i32
    %104 = tpu.dynamic_rotate %99 by %c3_i32_41 dim 0 : vector<16x128xf32>, i32 -> vector<16x128xf32>
    %105 = arith.mulf %38, %104 : vector<16x128xf32>
    %106 = tpu.concatenate %99, %101, %103, %105 in 1 : vector<16x128xf32>, vector<16x128xf32>, vector<16x128xf32>, vector<16x128xf32> -> vector<16x512xf32>
    %c1 = arith.constant 1 : index
    %c0_42 = arith.constant 0 : index
    %c0_43 = arith.constant 0 : index
    %107 = vector.load %arg2[%c1, %c0_42, %c0_43] : memref<4x512x128xf32, #tpu.memory_space<vmem>>, vector<1x512x128xf32>
    %108 = vector.shape_cast %107 : vector<1x512x128xf32> to vector<512x128xf32>
    %cst_44 = arith.constant dense<0.000000e+00> : vector<16x128xf32>
    %109 = tpu.matmul %106, %108, %cst_44 {dimension_numbers = #tpu.dot_dimension_numbers<[1], [0], [0], [1], [0, 0, 1, 1], [], []>} : vector<16x512xf32>, vector<512x128xf32>, vector<16x128xf32> -> vector<16x128xf32>
    %c1_45 = arith.constant 1 : index
    %c0_46 = arith.constant 0 : index
    %c0_47 = arith.constant 0 : index
    %110 = vector.load %arg3[%c1_45, %c0_46, %c0_47] : memref<4x1x128xf32, #tpu.memory_space<vmem>>, vector<1x1x128xf32>
    %111 = vector.shape_cast %110 : vector<1x1x128xf32> to vector<1x128xf32>
    %112 = vector.broadcast %111 : vector<1x128xf32> to vector<16x128xf32>
    %113 = arith.addf %109, %112 : vector<16x128xf32>
    %114 = vector.shape_cast %113 : vector<16x128xf32> to vector<1x16x128xf32>
    %cst_48 = arith.constant dense<0.000000e+00> : vector<1x128xf32>
    %115 = vector.multi_reduction <add>, %114, %cst_48 [1] : vector<1x16x128xf32> to vector<1x128xf32>
    %116 = vector.shape_cast %115 : vector<1x128xf32> to vector<1x1x128xf32>
    %cst_49 = arith.constant 1.600000e+01 : f32
    %117 = vector.broadcast %cst_49 : f32 to vector<1x1x128xf32>
    %118 = arith.divf %116, %117 : vector<1x1x128xf32>
    %119 = arith.mulf %114, %114 : vector<1x16x128xf32>
    %cst_50 = arith.constant dense<0.000000e+00> : vector<1x128xf32>
    %120 = vector.multi_reduction <add>, %119, %cst_50 [1] : vector<1x16x128xf32> to vector<1x128xf32>
    %121 = vector.shape_cast %120 : vector<1x128xf32> to vector<1x1x128xf32>
    %cst_51 = arith.constant 1.600000e+01 : f32
    %122 = vector.broadcast %cst_51 : f32 to vector<1x1x128xf32>
    %123 = arith.divf %121, %122 : vector<1x1x128xf32>
    %c1_52 = arith.constant 1 : index
    %c0_53 = arith.constant 0 : index
    %c0_54 = arith.constant 0 : index
    %124 = vector.load %arg6[%c1_52, %c0_53, %c0_54] : memref<4x1x128xf32, #tpu.memory_space<vmem>>, vector<1x1x128xf32>
    %125 = vector.shape_cast %124 : vector<1x1x128xf32> to vector<1x128xf32>
    %cst_55 = arith.constant 2.000000e+00 : f32
    %126 = vector.broadcast %cst_55 : f32 to vector<1x128xf32>
    %127 = arith.mulf %126, %125 : vector<1x128xf32>
    %128 = arith.mulf %125, %125 : vector<1x128xf32>
    %129 = arith.subf %127, %128 : vector<1x128xf32>
    %130 = arith.mulf %118, %118 : vector<1x1x128xf32>
    %131 = vector.shape_cast %129 : vector<1x128xf32> to vector<1x1x128xf32>
    %132 = arith.mulf %131, %130 : vector<1x1x128xf32>
    %133 = arith.subf %123, %132 : vector<1x1x128xf32>
    %cst_56 = arith.constant 0.000000e+00 : f32
    %134 = vector.broadcast %cst_56 : f32 to vector<1x1x128xf32>
    %135 = arith.maximumf %133, %134 : vector<1x1x128xf32>
    %cst_57 = arith.constant 9.99999974E-6 : f32
    %136 = vector.broadcast %cst_57 : f32 to vector<1x1x128xf32>
    %137 = arith.addf %135, %136 : vector<1x1x128xf32>
    %138 = math.rsqrt %137 : vector<1x1x128xf32>
    %c1_58 = arith.constant 1 : index
    %c0_59 = arith.constant 0 : index
    %c0_60 = arith.constant 0 : index
    %139 = vector.load %arg4[%c1_58, %c0_59, %c0_60] : memref<4x1x128xf32, #tpu.memory_space<vmem>>, vector<1x1x128xf32>
    %140 = vector.shape_cast %139 : vector<1x1x128xf32> to vector<1x128xf32>
    %141 = vector.shape_cast %125 : vector<1x128xf32> to vector<1x1x128xf32>
    %142 = arith.mulf %141, %118 : vector<1x1x128xf32>
    %143 = vector.broadcast %142 : vector<1x1x128xf32> to vector<1x16x128xf32>
    %144 = arith.subf %114, %143 : vector<1x16x128xf32>
    %145 = vector.shape_cast %140 : vector<1x128xf32> to vector<1x1x128xf32>
    %146 = vector.broadcast %145 : vector<1x1x128xf32> to vector<1x16x128xf32>
    %147 = arith.mulf %146, %144 : vector<1x16x128xf32>
    %148 = vector.broadcast %138 : vector<1x1x128xf32> to vector<1x16x128xf32>
    %149 = arith.mulf %147, %148 : vector<1x16x128xf32>
    %c1_61 = arith.constant 1 : index
    %c0_62 = arith.constant 0 : index
    %c0_63 = arith.constant 0 : index
    %150 = vector.load %arg5[%c1_61, %c0_62, %c0_63] : memref<4x1x128xf32, #tpu.memory_space<vmem>>, vector<1x1x128xf32>
    %151 = vector.shape_cast %150 : vector<1x1x128xf32> to vector<1x128xf32>
    %152 = vector.shape_cast %151 : vector<1x128xf32> to vector<1x1x128xf32>
    %153 = vector.broadcast %152 : vector<1x1x128xf32> to vector<1x16x128xf32>
    %154 = arith.addf %149, %153 : vector<1x16x128xf32>
    %155 = vector.shape_cast %154 : vector<1x16x128xf32> to vector<16x128xf32>
    %cst_64 = arith.constant 0.000000e+00 : f32
    %156 = vector.broadcast %cst_64 : f32 to vector<16x128xf32>
    %157 = arith.cmpf ogt, %155, %156 : vector<16x128xf32>
    %cst_65 = arith.constant 1.000000e-01 : f32
    %158 = vector.broadcast %cst_65 : f32 to vector<16x128xf32>
    %159 = arith.mulf %158, %155 : vector<16x128xf32>
    %160 = arith.select %157, %155, %159 : vector<16x128xi1>, vector<16x128xf32>
    %c1_i32_66 = arith.constant 1 : i32
    %161 = tpu.dynamic_rotate %160 by %c1_i32_66 dim 0 : vector<16x128xf32>, i32 -> vector<16x128xf32>
    %162 = arith.mulf %26, %161 : vector<16x128xf32>
    %c2_i32_67 = arith.constant 2 : i32
    %163 = tpu.dynamic_rotate %160 by %c2_i32_67 dim 0 : vector<16x128xf32>, i32 -> vector<16x128xf32>
    %164 = arith.mulf %32, %163 : vector<16x128xf32>
    %c3_i32_68 = arith.constant 3 : i32
    %165 = tpu.dynamic_rotate %160 by %c3_i32_68 dim 0 : vector<16x128xf32>, i32 -> vector<16x128xf32>
    %166 = arith.mulf %38, %165 : vector<16x128xf32>
    %167 = tpu.concatenate %160, %162, %164, %166 in 1 : vector<16x128xf32>, vector<16x128xf32>, vector<16x128xf32>, vector<16x128xf32> -> vector<16x512xf32>
    %c2 = arith.constant 2 : index
    %c0_69 = arith.constant 0 : index
    %c0_70 = arith.constant 0 : index
    %168 = vector.load %arg2[%c2, %c0_69, %c0_70] : memref<4x512x128xf32, #tpu.memory_space<vmem>>, vector<1x512x128xf32>
    %169 = vector.shape_cast %168 : vector<1x512x128xf32> to vector<512x128xf32>
    %cst_71 = arith.constant dense<0.000000e+00> : vector<16x128xf32>
    %170 = tpu.matmul %167, %169, %cst_71 {dimension_numbers = #tpu.dot_dimension_numbers<[1], [0], [0], [1], [0, 0, 1, 1], [], []>} : vector<16x512xf32>, vector<512x128xf32>, vector<16x128xf32> -> vector<16x128xf32>
    %c2_72 = arith.constant 2 : index
    %c0_73 = arith.constant 0 : index
    %c0_74 = arith.constant 0 : index
    %171 = vector.load %arg3[%c2_72, %c0_73, %c0_74] : memref<4x1x128xf32, #tpu.memory_space<vmem>>, vector<1x1x128xf32>
    %172 = vector.shape_cast %171 : vector<1x1x128xf32> to vector<1x128xf32>
    %173 = vector.broadcast %172 : vector<1x128xf32> to vector<16x128xf32>
    %174 = arith.addf %170, %173 : vector<16x128xf32>
    %175 = vector.shape_cast %174 : vector<16x128xf32> to vector<1x16x128xf32>
    %cst_75 = arith.constant dense<0.000000e+00> : vector<1x128xf32>
    %176 = vector.multi_reduction <add>, %175, %cst_75 [1] : vector<1x16x128xf32> to vector<1x128xf32>
    %177 = vector.shape_cast %176 : vector<1x128xf32> to vector<1x1x128xf32>
    %cst_76 = arith.constant 1.600000e+01 : f32
    %178 = vector.broadcast %cst_76 : f32 to vector<1x1x128xf32>
    %179 = arith.divf %177, %178 : vector<1x1x128xf32>
    %180 = arith.mulf %175, %175 : vector<1x16x128xf32>
    %cst_77 = arith.constant dense<0.000000e+00> : vector<1x128xf32>
    %181 = vector.multi_reduction <add>, %180, %cst_77 [1] : vector<1x16x128xf32> to vector<1x128xf32>
    %182 = vector.shape_cast %181 : vector<1x128xf32> to vector<1x1x128xf32>
    %cst_78 = arith.constant 1.600000e+01 : f32
    %183 = vector.broadcast %cst_78 : f32 to vector<1x1x128xf32>
    %184 = arith.divf %182, %183 : vector<1x1x128xf32>
    %c2_79 = arith.constant 2 : index
    %c0_80 = arith.constant 0 : index
    %c0_81 = arith.constant 0 : index
    %185 = vector.load %arg6[%c2_79, %c0_80, %c0_81] : memref<4x1x128xf32, #tpu.memory_space<vmem>>, vector<1x1x128xf32>
    %186 = vector.shape_cast %185 : vector<1x1x128xf32> to vector<1x128xf32>
    %cst_82 = arith.constant 2.000000e+00 : f32
    %187 = vector.broadcast %cst_82 : f32 to vector<1x128xf32>
    %188 = arith.mulf %187, %186 : vector<1x128xf32>
    %189 = arith.mulf %186, %186 : vector<1x128xf32>
    %190 = arith.subf %188, %189 : vector<1x128xf32>
    %191 = arith.mulf %179, %179 : vector<1x1x128xf32>
    %192 = vector.shape_cast %190 : vector<1x128xf32> to vector<1x1x128xf32>
    %193 = arith.mulf %192, %191 : vector<1x1x128xf32>
    %194 = arith.subf %184, %193 : vector<1x1x128xf32>
    %cst_83 = arith.constant 0.000000e+00 : f32
    %195 = vector.broadcast %cst_83 : f32 to vector<1x1x128xf32>
    %196 = arith.maximumf %194, %195 : vector<1x1x128xf32>
    %cst_84 = arith.constant 9.99999974E-6 : f32
    %197 = vector.broadcast %cst_84 : f32 to vector<1x1x128xf32>
    %198 = arith.addf %196, %197 : vector<1x1x128xf32>
    %199 = math.rsqrt %198 : vector<1x1x128xf32>
    %c2_85 = arith.constant 2 : index
    %c0_86 = arith.constant 0 : index
    %c0_87 = arith.constant 0 : index
    %200 = vector.load %arg4[%c2_85, %c0_86, %c0_87] : memref<4x1x128xf32, #tpu.memory_space<vmem>>, vector<1x1x128xf32>
    %201 = vector.shape_cast %200 : vector<1x1x128xf32> to vector<1x128xf32>
    %202 = vector.shape_cast %186 : vector<1x128xf32> to vector<1x1x128xf32>
    %203 = arith.mulf %202, %179 : vector<1x1x128xf32>
    %204 = vector.broadcast %203 : vector<1x1x128xf32> to vector<1x16x128xf32>
    %205 = arith.subf %175, %204 : vector<1x16x128xf32>
    %206 = vector.shape_cast %201 : vector<1x128xf32> to vector<1x1x128xf32>
    %207 = vector.broadcast %206 : vector<1x1x128xf32> to vector<1x16x128xf32>
    %208 = arith.mulf %207, %205 : vector<1x16x128xf32>
    %209 = vector.broadcast %199 : vector<1x1x128xf32> to vector<1x16x128xf32>
    %210 = arith.mulf %208, %209 : vector<1x16x128xf32>
    %c2_88 = arith.constant 2 : index
    %c0_89 = arith.constant 0 : index
    %c0_90 = arith.constant 0 : index
    %211 = vector.load %arg5[%c2_88, %c0_89, %c0_90] : memref<4x1x128xf32, #tpu.memory_space<vmem>>, vector<1x1x128xf32>
    %212 = vector.shape_cast %211 : vector<1x1x128xf32> to vector<1x128xf32>
    %213 = vector.shape_cast %212 : vector<1x128xf32> to vector<1x1x128xf32>
    %214 = vector.broadcast %213 : vector<1x1x128xf32> to vector<1x16x128xf32>
    %215 = arith.addf %210, %214 : vector<1x16x128xf32>
    %216 = vector.shape_cast %215 : vector<1x16x128xf32> to vector<16x128xf32>
    %cst_91 = arith.constant 0.000000e+00 : f32
    %217 = vector.broadcast %cst_91 : f32 to vector<16x128xf32>
    %218 = arith.cmpf ogt, %216, %217 : vector<16x128xf32>
    %cst_92 = arith.constant 1.000000e-01 : f32
    %219 = vector.broadcast %cst_92 : f32 to vector<16x128xf32>
    %220 = arith.mulf %219, %216 : vector<16x128xf32>
    %221 = arith.select %218, %216, %220 : vector<16x128xi1>, vector<16x128xf32>
    %c1_i32_93 = arith.constant 1 : i32
    %222 = tpu.dynamic_rotate %221 by %c1_i32_93 dim 0 : vector<16x128xf32>, i32 -> vector<16x128xf32>
    %223 = arith.mulf %26, %222 : vector<16x128xf32>
    %c2_i32_94 = arith.constant 2 : i32
    %224 = tpu.dynamic_rotate %221 by %c2_i32_94 dim 0 : vector<16x128xf32>, i32 -> vector<16x128xf32>
    %225 = arith.mulf %32, %224 : vector<16x128xf32>
    %c3_i32_95 = arith.constant 3 : i32
    %226 = tpu.dynamic_rotate %221 by %c3_i32_95 dim 0 : vector<16x128xf32>, i32 -> vector<16x128xf32>
    %227 = arith.mulf %38, %226 : vector<16x128xf32>
    %228 = tpu.concatenate %221, %223, %225, %227 in 1 : vector<16x128xf32>, vector<16x128xf32>, vector<16x128xf32>, vector<16x128xf32> -> vector<16x512xf32>
    %c3 = arith.constant 3 : index
    %c0_96 = arith.constant 0 : index
    %c0_97 = arith.constant 0 : index
    %229 = vector.load %arg2[%c3, %c0_96, %c0_97] : memref<4x512x128xf32, #tpu.memory_space<vmem>>, vector<1x512x128xf32>
    %230 = vector.shape_cast %229 : vector<1x512x128xf32> to vector<512x128xf32>
    %cst_98 = arith.constant dense<0.000000e+00> : vector<16x128xf32>
    %231 = tpu.matmul %228, %230, %cst_98 {dimension_numbers = #tpu.dot_dimension_numbers<[1], [0], [0], [1], [0, 0, 1, 1], [], []>} : vector<16x512xf32>, vector<512x128xf32>, vector<16x128xf32> -> vector<16x128xf32>
    %c3_99 = arith.constant 3 : index
    %c0_100 = arith.constant 0 : index
    %c0_101 = arith.constant 0 : index
    %232 = vector.load %arg3[%c3_99, %c0_100, %c0_101] : memref<4x1x128xf32, #tpu.memory_space<vmem>>, vector<1x1x128xf32>
    %233 = vector.shape_cast %232 : vector<1x1x128xf32> to vector<1x128xf32>
    %234 = vector.broadcast %233 : vector<1x128xf32> to vector<16x128xf32>
    %235 = arith.addf %231, %234 : vector<16x128xf32>
    %236 = vector.shape_cast %235 : vector<16x128xf32> to vector<1x16x128xf32>
    %cst_102 = arith.constant dense<0.000000e+00> : vector<1x128xf32>
    %237 = vector.multi_reduction <add>, %236, %cst_102 [1] : vector<1x16x128xf32> to vector<1x128xf32>
    %238 = vector.shape_cast %237 : vector<1x128xf32> to vector<1x1x128xf32>
    %cst_103 = arith.constant 1.600000e+01 : f32
    %239 = vector.broadcast %cst_103 : f32 to vector<1x1x128xf32>
    %240 = arith.divf %238, %239 : vector<1x1x128xf32>
    %241 = arith.mulf %236, %236 : vector<1x16x128xf32>
    %cst_104 = arith.constant dense<0.000000e+00> : vector<1x128xf32>
    %242 = vector.multi_reduction <add>, %241, %cst_104 [1] : vector<1x16x128xf32> to vector<1x128xf32>
    %243 = vector.shape_cast %242 : vector<1x128xf32> to vector<1x1x128xf32>
    %cst_105 = arith.constant 1.600000e+01 : f32
    %244 = vector.broadcast %cst_105 : f32 to vector<1x1x128xf32>
    %245 = arith.divf %243, %244 : vector<1x1x128xf32>
    %c3_106 = arith.constant 3 : index
    %c0_107 = arith.constant 0 : index
    %c0_108 = arith.constant 0 : index
    %246 = vector.load %arg6[%c3_106, %c0_107, %c0_108] : memref<4x1x128xf32, #tpu.memory_space<vmem>>, vector<1x1x128xf32>
    %247 = vector.shape_cast %246 : vector<1x1x128xf32> to vector<1x128xf32>
    %cst_109 = arith.constant 2.000000e+00 : f32
    %248 = vector.broadcast %cst_109 : f32 to vector<1x128xf32>
    %249 = arith.mulf %248, %247 : vector<1x128xf32>
    %250 = arith.mulf %247, %247 : vector<1x128xf32>
    %251 = arith.subf %249, %250 : vector<1x128xf32>
    %252 = arith.mulf %240, %240 : vector<1x1x128xf32>
    %253 = vector.shape_cast %251 : vector<1x128xf32> to vector<1x1x128xf32>
    %254 = arith.mulf %253, %252 : vector<1x1x128xf32>
    %255 = arith.subf %245, %254 : vector<1x1x128xf32>
    %cst_110 = arith.constant 0.000000e+00 : f32
    %256 = vector.broadcast %cst_110 : f32 to vector<1x1x128xf32>
    %257 = arith.maximumf %255, %256 : vector<1x1x128xf32>
    %cst_111 = arith.constant 9.99999974E-6 : f32
    %258 = vector.broadcast %cst_111 : f32 to vector<1x1x128xf32>
    %259 = arith.addf %257, %258 : vector<1x1x128xf32>
    %260 = math.rsqrt %259 : vector<1x1x128xf32>
    %c3_112 = arith.constant 3 : index
    %c0_113 = arith.constant 0 : index
    %c0_114 = arith.constant 0 : index
    %261 = vector.load %arg4[%c3_112, %c0_113, %c0_114] : memref<4x1x128xf32, #tpu.memory_space<vmem>>, vector<1x1x128xf32>
    %262 = vector.shape_cast %261 : vector<1x1x128xf32> to vector<1x128xf32>
    %263 = vector.shape_cast %247 : vector<1x128xf32> to vector<1x1x128xf32>
    %264 = arith.mulf %263, %240 : vector<1x1x128xf32>
    %265 = vector.broadcast %264 : vector<1x1x128xf32> to vector<1x16x128xf32>
    %266 = arith.subf %236, %265 : vector<1x16x128xf32>
    %267 = vector.shape_cast %262 : vector<1x128xf32> to vector<1x1x128xf32>
    %268 = vector.broadcast %267 : vector<1x1x128xf32> to vector<1x16x128xf32>
    %269 = arith.mulf %268, %266 : vector<1x16x128xf32>
    %270 = vector.broadcast %260 : vector<1x1x128xf32> to vector<1x16x128xf32>
    %271 = arith.mulf %269, %270 : vector<1x16x128xf32>
    %c3_115 = arith.constant 3 : index
    %c0_116 = arith.constant 0 : index
    %c0_117 = arith.constant 0 : index
    %272 = vector.load %arg5[%c3_115, %c0_116, %c0_117] : memref<4x1x128xf32, #tpu.memory_space<vmem>>, vector<1x1x128xf32>
    %273 = vector.shape_cast %272 : vector<1x1x128xf32> to vector<1x128xf32>
    %274 = vector.shape_cast %273 : vector<1x128xf32> to vector<1x1x128xf32>
    %275 = vector.broadcast %274 : vector<1x1x128xf32> to vector<1x16x128xf32>
    %276 = arith.addf %271, %275 : vector<1x16x128xf32>
    %277 = vector.shape_cast %276 : vector<1x16x128xf32> to vector<16x128xf32>
    %278 = arith.addf %1, %277 : vector<16x128xf32>
    %cst_118 = arith.constant 0.000000e+00 : f32
    %279 = vector.broadcast %cst_118 : f32 to vector<16x128xf32>
    %280 = arith.maximumf %278, %279 : vector<16x128xf32>
    %281 = vector.shape_cast %280 : vector<16x128xf32> to vector<1x16x128xf32>
    %cst_119 = arith.constant dense<0.000000e+00> : vector<1x128xf32>
    %282 = vector.multi_reduction <add>, %281, %cst_119 [1] : vector<1x16x128xf32> to vector<1x128xf32>
    %cst_120 = arith.constant 1.600000e+01 : f32
    %283 = vector.broadcast %cst_120 : f32 to vector<1x128xf32>
    %284 = arith.divf %282, %283 : vector<1x128xf32>
    %c0_121 = arith.constant 0 : index
    %c0_122 = arith.constant 0 : index
    %285 = vector.load %arg7[%c0_121, %c0_122] : memref<128x32xf32, #tpu.memory_space<vmem>>, vector<128x32xf32>
    %cst_123 = arith.constant dense<0.000000e+00> : vector<1x32xf32>
    %286 = tpu.matmul %284, %285, %cst_123 {dimension_numbers = #tpu.dot_dimension_numbers<[1], [0], [0], [1], [0, 0, 1, 1], [], []>} : vector<1x128xf32>, vector<128x32xf32>, vector<1x32xf32> -> vector<1x32xf32>
    %c0_124 = arith.constant 0 : index
    %c0_125 = arith.constant 0 : index
    %287 = vector.load %arg8[%c0_124, %c0_125] : memref<1x32xf32, #tpu.memory_space<vmem>>, vector<1x32xf32>
    %288 = arith.addf %286, %287 : vector<1x32xf32>
    %cst_126 = arith.constant 2.000000e+01 : f32
    %289 = vector.broadcast %cst_126 : f32 to vector<1x32xf32>
    %290 = arith.cmpf ogt, %288, %289 : vector<1x32xf32>
    %cst_127 = arith.constant 2.000000e+01 : f32
    %291 = vector.broadcast %cst_127 : f32 to vector<1x32xf32>
    %292 = arith.minimumf %288, %291 : vector<1x32xf32>
    %293 = math.exp %292 : vector<1x32xf32>
    %294 = math.log1p %293 : vector<1x32xf32>
    %295 = arith.select %290, %288, %294 : vector<1x32xi1>, vector<1x32xf32>
    %296 = vector.shape_cast %295 : vector<1x32xf32> to vector<1x1x32xf32>
    %c0_128 = arith.constant 0 : index
    %c0_129 = arith.constant 0 : index
    %c0_130 = arith.constant 0 : index
    %297 = vector.load %arg9[%c0_128, %c0_129, %c0_130] : memref<1x1x32xf32, #tpu.memory_space<vmem>>, vector<1x1x32xf32>
    tpu.vector_store %arg9[%c0_128, %c0_129, %c0_130], %296 {strides = array<i32>} : memref<1x1x32xf32, #tpu.memory_space<vmem>>, vector<1x1x32xf32>,
    return
  }
  func.func @transform_0(%arg0: i32) -> (i32, i32, i32) {
    %c0_i32 = arith.constant 0 : i32
    %c0_i32_0 = arith.constant 0 : i32
    %c0_i32_1 = arith.constant 0 : i32
    return %arg0, %c0_i32, %c0_i32_0 : i32, i32, i32
  }
  func.func @transform_1(%arg0: i32) -> (i32, i32, i32) {
    %c0_i32 = arith.constant 0 : i32
    %c0_i32_0 = arith.constant 0 : i32
    %c0_i32_1 = arith.constant 0 : i32
    %c0_i32_2 = arith.constant 0 : i32
    return %c0_i32, %c0_i32_0, %c0_i32_1 : i32, i32, i32
  }
  func.func @transform_2(%arg0: i32) -> (i32, i32, i32) {
    %c0_i32 = arith.constant 0 : i32
    %c0_i32_0 = arith.constant 0 : i32
    %c0_i32_1 = arith.constant 0 : i32
    %c0_i32_2 = arith.constant 0 : i32
    return %c0_i32, %c0_i32_0, %c0_i32_1 : i32, i32, i32
  }
  func.func @transform_3(%arg0: i32) -> (i32, i32, i32) {
    %c0_i32 = arith.constant 0 : i32
    %c0_i32_0 = arith.constant 0 : i32
    %c0_i32_1 = arith.constant 0 : i32
    %c0_i32_2 = arith.constant 0 : i32
    return %c0_i32, %c0_i32_0, %c0_i32_1 : i32, i32, i32
  }
  func.func @transform_4(%arg0: i32) -> (i32, i32, i32) {
    %c0_i32 = arith.constant 0 : i32
    %c0_i32_0 = arith.constant 0 : i32
    %c0_i32_1 = arith.constant 0 : i32
    %c0_i32_2 = arith.constant 0 : i32
    return %c0_i32, %c0_i32_0, %c0_i32_1 : i32, i32, i32
  }
  func.func @transform_5(%arg0: i32) -> (i32, i32, i32) {
    %c0_i32 = arith.constant 0 : i32
    %c0_i32_0 = arith.constant 0 : i32
    %c0_i32_1 = arith.constant 0 : i32
    %c0_i32_2 = arith.constant 0 : i32
    return %c0_i32, %c0_i32_0, %c0_i32_1 : i32, i32, i32
  }
  func.func @transform_6(%arg0: i32) -> (i32, i32) {
    %c0_i32 = arith.constant 0 : i32
    %c0_i32_0 = arith.constant 0 : i32
    %c0_i32_1 = arith.constant 0 : i32
    return %c0_i32, %c0_i32_0 : i32, i32
  }
  func.func @transform_7(%arg0: i32) -> (i32, i32) {
    %c0_i32 = arith.constant 0 : i32
    %c0_i32_0 = arith.constant 0 : i32
    %c0_i32_1 = arith.constant 0 : i32
    return %c0_i32, %c0_i32_0 : i32, i32
  }
  func.func @transform_8(%arg0: i32) -> (i32, i32, i32) {
    %c0_i32 = arith.constant 0 : i32
    %c0_i32_0 = arith.constant 0 : i32
    %c0_i32_1 = arith.constant 0 : i32
    return %arg0, %c0_i32, %c0_i32_0 : i32, i32, i32
  }
}

</mosaic_0001>

<bundles_post_ra>
// kernel: tpu_custom_call.1
= control target key start
LH: loop header
LB: loop body
LE: loop exit
PB: predicated region body
PF: predicated region fallthrough
CT: control target
= control target key end

     0   :  { %13 = vsyncpa [#allocation3], 0  ;;  %s2220_s0 = inlined_call_operand.vmem [shape: f32[1,16,128], index: 0, kind: input, shape index: {}]   ;;  %s2221_s1 = inlined_call_operand.hbm [shape: f32[4,512,128], index: 1, kind: input, shape index: {}]   ;;  %s2222_s2 = inlined_call_operand.vmem [shape: f32[4,1,128], index: 2, kind: input, shape index: {}]   ;;  %s2223_s3 = inlined_call_operand.vmem [shape: f32[4,1,128], index: 3, kind: input, shape index: {}]   ;;  %s2224_s4 = inlined_call_operand.vmem [shape: f32[4,1,128], index: 4, kind: input, shape index: {}]   ;;  %s2225_s5 = inlined_call_operand.vmem [shape: f32[4,1,128], index: 5, kind: input, shape index: {}]   ;;  %s2226_s6 = inlined_call_operand.vmem [shape: f32[128,32], index: 6, kind: input, shape index: {}]   ;;  %s2227_s7 = inlined_call_operand.vmem [shape: f32[1,32], index: 7, kind: input, shape index: {}]   ;;  %s2228_s8 = inlined_call_operand.hbm [shape: f32[1,1,32], index: 8, kind: output, shape index: {}]  }
   0x1   :  { %14 = vsyncpa [#allocation4], 0  ;;  %s1904_s27 = smov [#allocation2]  }
   0x2   :  { %s22_s28 = sshll.u32 %s1904_s27, 4  ;;  %s23_s28 = int_to_ptr.vmem [resolvable:$true] %s22_s28 }
   0x3   :  { %s1868_s29 = scalar_lea.vmem %s23_s28, 32768  ;;  %p1873_p1 = scmp.lt.s32.totalorder %s23_s28, %s23_s28 }
   0x4   :  { %p1869_p0 = scmp.ne.s32.totalorder %s23_s28, %s1868_s29  ;;  %p1874_p2 = scmp.lt.s32.totalorder %s1868_s29, %s1868_s29 }
   0x6   :  { %p1875_p3 = por %p1874_p2, %p1873_p1 }
   0x8   :  { %p1876_p4 = pnand %p1875_p3, %p1869_p0 }
   0xa   :  { %1879 = shalt.err (!%p1876_p4)
}
   0xb   :  { %s1905_s30 = smov 128   ;;  %s1906_s9 = smov 8  }
   0xc   :  { %28 = dma.hbm_to_vmem [thread:$0]  %s2221_s1, 32768, %s23_s28, [#allocation3], %s1905_s30, %s1905_s30, %s1906_s9  }
   0xd   :  { %1900 = dma.done.wait [#allocation3], 32768  }
   0xe   :  { %1901 = vsyncadd [#allocation3], 4294934528  ;;  %v145_v0 = vld [vmem:[#allocation2 + $0xf8] sm:$0xff]  ;;  %v144_v4 = vld [vmem:[#allocation2 + $0xf0] sm:$0xff]  ;;  %v46_v24 = vlaneseq  ;;  %vm1908_vm13 = vmmov 0   ;;  %vm1443_vm15 = vcmask 253952  }
   0xf   :  { %v177_v1 = vld [vmem:[#allocation2 + $0x1f8] sm:$0xff]  ;;  %1484 = vmatprep.subr.mxu0 %v145_v0  ;;  %v176_v5 = vld [vmem:[#allocation2 + $0x1f0] sm:$0xff]  ;;  %v143_v8 = vld [vmem:[#allocation2 + $0xe8] sm:$0xff] }
  0x10   :  { %v129_v2 = vld [vmem:[#allocation2 + $0x78] sm:$0xff]  ;;  %1522 = vmatprep.subr.mxu1 %v177_v1  ;;  %v128_v6 = vld [vmem:[#allocation2 + $0x70] sm:$0xff]  ;;  %v175_v9 = vld [vmem:[#allocation2 + $0x1e8] sm:$0xff]  ;;  %v1958_v33 = vshrl.u32 %v46_v24, 7 }
  0x11   :  { %v161_v3 = vld [vmem:[#allocation2 + $0x178] sm:$0xff]  ;;  %1485 = vmatpush3.msra.mxu0 %v129_v2  ;;  %v160_v7 = vld [vmem:[#allocation2 + $0x170] sm:$0xff]  ;;  %v127_v10 = vld [vmem:[#allocation2 + $0x68] sm:$0xff] }
  0x12   :  { %1523 = vmatpush3.msra.mxu1 %v161_v3  ;;  %1486 = vmatprep.subr.mxu0 %v144_v4  ;;  %v159_v11 = vld [vmem:[#allocation2 + $0x168] sm:$0xff]  ;;  %v142_v12 = vld [vmem:[#allocation2 + $0xe0] sm:$0xff]  ;;  %v141_v16 = vld [vmem:[#allocation2 + $0xd8] sm:$0xff]  ;;  %v1961_v42 = vand.u32 15, %v1958_v33  ;;  %v48_v43 = vadd.s32 8, %v1958_v33  ;;  %vm95_vm1 = vcmp.lt.s32.totalorder %v1958_v33, 1 }
  0x13   :  { %1524 = vmatprep.subr.mxu1 %v176_v5  ;;  %1487 = vmatpush3.msra.mxu0 %v128_v6  ;;  %v174_v13 = vld [vmem:[#allocation2 + $0x1e0] sm:$0xff]  ;;  %v173_v17 = vld [vmem:[#allocation2 + $0x1d8] sm:$0xff]  ;;  %v140_v20 = vld [vmem:[#allocation2 + $0xd0] sm:$0xff]  ;;  %vm109_vm3 = vcmp.lt.s32.totalorder %v1958_v33, 3  ;;  %vm102_vm5 = vcmp.lt.s32.totalorder %v1958_v33, 2  ;;  %v1907_v5 = vmov 0.0  }
  0x14   :  { %1525 = vmatpush3.msra.mxu1 %v160_v7  ;;  %1488 = vmatprep.subr.mxu0 %v143_v8  ;;  %v126_v14 = vld [vmem:[#allocation2 + $0x60] sm:$0xff]  ;;  %v125_v18 = vld [vmem:[#allocation2 + $0x58] sm:$0xff]  ;;  %v172_v21 = vld [vmem:[#allocation2 + $0x1d0] sm:$0xff]  ;;  %vm75_vm0 = vcmp.ge.s32.totalorder %v1961_v42, 1  ;;  %v60_v54 = vand.u32 15, %v48_v43  ;;  %vm87_vm2 = vcmp.ge.s32.totalorder %v1961_v42, 3 }
  0x15   :  { %1526 = vmatprep.subr.mxu1 %v175_v9  ;;  %v158_v15 = vld [vmem:[#allocation2 + $0x160] sm:$0xff]  ;;  %1489 = vmatpush3.msra.mxu0 %v127_v10  ;;  %v157_v19 = vld [vmem:[#allocation2 + $0x158] sm:$0xff]  ;;  %v124_v22 = vld [vmem:[#allocation2 + $0x50] sm:$0xff]  ;;  %vm81_vm4 = vcmp.ge.s32.totalorder %v1961_v42, 2  ;;  %v1989_v6 = vsel %vm75_vm0, 1.0, %v1907_v5 }
  0x16   :  { %1527 = vmatpush3.msra.mxu1 %v159_v11  ;;  %1490 = vmatprep.subr.mxu0 %v142_v12  ;;  %v156_v23 = vld [vmem:[#allocation2 + $0x150] sm:$0xff]  ;;  %v139_v25 = vld [vmem:[#allocation2 + $0xc8] sm:$0xff]  ;;  %v138_v29 = vld [vmem:[#allocation2 + $0xc0] sm:$0xff]  ;;  %vm1993_vm6 = vcmp.le.s32.totalorder %v60_v54, 14  ;;  %v2000_v11 = vsel %vm87_vm2, 1.0, %v1907_v5 }
  0x17   :  { %1528 = vmatprep.subr.mxu1 %v174_v13  ;;  %1491 = vmatpush3.msra.mxu0 %v126_v14  ;;  %v171_v26 = vld [vmem:[#allocation2 + $0x1c8] sm:$0xff]  ;;  %v170_v30 = vld [vmem:[#allocation2 + $0x1c0] sm:$0xff]  ;;  %v137_v34 = vld [vmem:[#allocation2 + $0xb8] sm:$0xff] }
  0x18   :  { %1529 = vmatpush3.msra.mxu1 %v158_v15  ;;  %1492 = vmatprep.subr.mxu0 %v141_v16  ;;  %v123_v27 = vld [vmem:[#allocation2 + $0x48] sm:$0xff]  ;;  %v122_v31 = vld [vmem:[#allocation2 + $0x40] sm:$0xff]  ;;  %v169_v35 = vld [vmem:[#allocation2 + $0x1b8] sm:$0xff]  ;;  %v2007_v15 = vsel %vm81_vm4, 1.0, %v1907_v5 }
  0x19   :  { %1530 = vmatprep.subr.mxu1 %v173_v17  ;;  %1493 = vmatpush3.msra.mxu0 %v125_v18  ;;  %v155_v28 = vld [vmem:[#allocation2 + $0x148] sm:$0xff]  ;;  %v154_v32 = vld [vmem:[#allocation2 + $0x140] sm:$0xff]  ;;  %v121_v36 = vld [vmem:[#allocation2 + $0x38] sm:$0xff] }
  0x1a   :  { %1531 = vmatpush3.msra.mxu1 %v157_v19  ;;  %1494 = vmatprep.subr.mxu0 %v140_v20  ;;  %v153_v37 = vld [vmem:[#allocation2 + $0x138] sm:$0xff]  ;;  %v136_v38 = vld [vmem:[#allocation2 + $0xb0] sm:$0xff]  ;;  %v135_v44 = vld [vmem:[#allocation2 + $0xa8] sm:$0xff]  ;;  %v2015_v20 = vsel %vm1993_vm6, 1.0, %v1907_v5 }
  0x1b   :  { %1532 = vmatprep.subr.mxu1 %v172_v21  ;;  %1495 = vmatpush3.msra.mxu0 %v124_v22  ;;  %v168_v39 = vld [vmem:[#allocation2 + $0x1b0] sm:$0xff]  ;;  %v167_v45 = vld [vmem:[#allocation2 + $0x1a8] sm:$0xff]  ;;  %v134_v48 = vld [vmem:[#allocation2 + $0xa0] sm:$0xff] }
  0x1c   :  { %1533 = vmatpush3.msra.mxu1 %v156_v23  ;;  %1496 = vmatprep.subr.mxu0 %v139_v25  ;;  %v120_v40 = vld [vmem:[#allocation2 + $0x30] sm:$0xff]  ;;  %v119_v46 = vld [vmem:[#allocation2 + $0x28] sm:$0xff]  ;;  %v166_v49 = vld [vmem:[#allocation2 + $0x1a0] sm:$0xff] }
  0x1d   :  { %1534 = vmatprep.subr.mxu1 %v171_v26  ;;  %1497 = vmatpush3.msra.mxu0 %v123_v27  ;;  %v152_v41 = vld [vmem:[#allocation2 + $0x130] sm:$0xff]  ;;  %v151_v47 = vld [vmem:[#allocation2 + $0x128] sm:$0xff]  ;;  %v118_v50 = vld [vmem:[#allocation2 + $0x20] sm:$0xff] }
  0x1e   :  { %1535 = vmatpush3.msra.mxu1 %v155_v28  ;;  %1498 = vmatprep.subr.mxu0 %v138_v29  ;;  %v150_v51 = vld [vmem:[#allocation2 + $0x120] sm:$0xff]  ;;  %v1972_v53 = vld [vmem:[%s2220_s0 + $0x8] sm:$0xff]  ;;  %v133_v55 = vld [vmem:[#allocation2 + $0x98] sm:$0xff] }
  0x1f   :  { %1536 = vmatprep.subr.mxu1 %v170_v30  ;;  %1499 = vmatpush3.msra.mxu0 %v122_v31  ;;  %v1967_v52 = vld [vmem:[%s2220_s0] sm:$0xff]  ;;  %v165_v56 = vld [vmem:[#allocation2 + $0x198] sm:$0xff]  ;;  %v94_v58 = vrot.slane %v1972_v53, 7  ;;  %v108_v60 = vrot.slane %v1972_v53, 5  ;;  %v101_v0 = vrot.slane %v1972_v53, 6  ;;  %v132_v1 = vld [vmem:[#allocation2 + $0x90] sm:$0xff] }
  0x20   :  { %1537 = vmatpush3.msra.mxu1 %v154_v32  ;;  %1500 = vmatprep.subr.mxu0 %v137_v34  ;;  %v93_v57 = vrot.slane %v1967_v52, 7  ;;  %v107_v59 = vrot.slane %v1967_v52, 5  ;;  %v117_v61 = vld [vmem:[#allocation2 + $0x18] sm:$0xff]  ;;  %v100_v63 = vrot.slane %v1967_v52, 6  ;;  %v164_v2 = vld [vmem:[#allocation2 + $0x190] sm:$0xff]  ;;  %v131_v9 = vld [vmem:[#allocation2 + $0x88] sm:$0xff] }
  0x21   :  { %1538 = vmatprep.subr.mxu1 %v169_v35  ;;  %1501 = vmatpush3.msra.mxu0 %v121_v36  ;;  %v149_v62 = vld [vmem:[#allocation2 + $0x118] sm:$0xff]  ;;  %v116_v3 = vld [vmem:[#allocation2 + $0x10] sm:$0xff]  ;;  %v163_v10 = vld [vmem:[#allocation2 + $0x188] sm:$0xff] }
  0x22   :  { %1539 = vmatpush3.msra.mxu1 %v153_v37  ;;  %1502 = vmatprep.subr.mxu0 %v136_v38  ;;  %v148_v4 = vld [vmem:[#allocation2 + $0x110] sm:$0xff]  ;;  %v97_v7 = vsel %vm95_vm1, %v94_v58, %v93_v57  ;;  %v111_v12 = vsel %vm109_vm3, %v108_v60, %v107_v59  ;;  %v115_v13 = vld [vmem:[#allocation2 + $0x8] sm:$0xff]  ;;  %v104_v16 = vsel %vm102_vm5, %v101_v0, %v100_v63  ;;  %v130_v17 = vld [vmem:[#allocation2 + $0x80] sm:$0xff] }
  0x23   :  { %1540 = vmatprep.subr.mxu1 %v168_v39  ;;  %1503 = vmatpush3.msra.mxu0 %v120_v40  ;;  %v147_v14 = vld [vmem:[#allocation2 + $0x108] sm:$0xff]  ;;  %v162_v18 = vld [vmem:[#allocation2 + $0x180] sm:$0xff]  ;;  %v98_v19 = vmul.f32 %v97_v7, %v1989_v6  ;;  %v96_v21 = vsel %vm95_vm1, %v93_v57, %v94_v58  ;;  %v110_v22 = vsel %vm109_vm3, %v107_v59, %v108_v60  ;;  %v453_v31 = vld [vmem:[#allocation2 + $0x2f8] sm:$0xff] }
  0x24   :  { %1541 = vmatpush3.msra.mxu1 %v152_v41  ;;  %1504 = vmatprep.subr.mxu0 %v135_v44  ;;  %v114_v23 = vld [vmem:[#allocation2] sm:$0xff]  ;;  %v112_v24 = vmul.f32 %v111_v12, %v2000_v11  ;;  %v105_v26 = vmul.f32 %v104_v16, %v2007_v15  ;;  %v99_v27 = vmul.f32 %v96_v21, %v2015_v20  ;;  %v485_v32 = vld [vmem:[#allocation2 + $0x3f8] sm:$0xff]  ;;  %v452_v36 = vld [vmem:[#allocation2 + $0x2f0] sm:$0xff] }
  0x25   :  { %1542 = vmatprep.subr.mxu1 %v167_v45  ;;  %1505 = vmatpush3.msra.mxu0 %v119_v46  ;;  %v146_v25 = vld [vmem:[#allocation2 + $0x100] sm:$0xff]  ;;  %v113_v28 = vmul.f32 %v110_v22, %v2015_v20  ;;  %v103_v29 = vsel %vm102_vm5, %v100_v63, %v101_v0  ;;  %v437_v34 = vld [vmem:[#allocation2 + $0x278] sm:$0xff]  ;;  %v484_v37 = vld [vmem:[#allocation2 + $0x3f0] sm:$0xff] }
  0x26   :  { %1543 = vmatpush3.msra.mxu1 %v151_v47  ;;  %1506 = vmatprep.subr.mxu0 %v134_v48  ;;  %v106_v30 = vmul.f32 %v103_v29, %v2015_v20  ;;  %v469_v35 = vld [vmem:[#allocation2 + $0x378] sm:$0xff]  ;;  %v436_v38 = vld [vmem:[#allocation2 + $0x270] sm:$0xff]  ;;  %v451_v40 = vld [vmem:[#allocation2 + $0x2e8] sm:$0xff] }
  0x27   :  { %1544 = vmatprep.subr.mxu1 %v166_v49  ;;  %1507 = vmatpush3.msra.mxu0 %v118_v50  ;;  %v468_v39 = vld [vmem:[#allocation2 + $0x370] sm:$0xff]  ;;  %v483_v41 = vld [vmem:[#allocation2 + $0x3e8] sm:$0xff]  ;;  %v450_v44 = vld [vmem:[#allocation2 + $0x2e0] sm:$0xff] }
  0x28   :  { %1545 = vmatpush3.msra.mxu1 %v150_v51  ;;  %1508 = vmatprep.subr.mxu0 %v133_v55  ;;  %v435_v42 = vld [vmem:[#allocation2 + $0x268] sm:$0xff]  ;;  %v482_v45 = vld [vmem:[#allocation2 + $0x3e0] sm:$0xff]  ;;  %v449_v48 = vld [vmem:[#allocation2 + $0x2d8] sm:$0xff] }
  0x29   :  { %1546 = vmatprep.subr.mxu1 %v165_v56  ;;  %1509 = vmatpush3.msra.mxu0 %v117_v61  ;;  %v467_v43 = vld [vmem:[#allocation2 + $0x368] sm:$0xff]  ;;  %v434_v46 = vld [vmem:[#allocation2 + $0x260] sm:$0xff]  ;;  %v481_v49 = vld [vmem:[#allocation2 + $0x3d8] sm:$0xff] }
  0x2a   :  { %1547 = vmatpush3.msra.mxu1 %v149_v62  ;;  %1510 = vmatprep.subr.mxu0 %v132_v1  ;;  %v466_v47 = vld [vmem:[#allocation2 + $0x360] sm:$0xff]  ;;  %v433_v50 = vld [vmem:[#allocation2 + $0x258] sm:$0xff]  ;;  %v432_v54 = vld [vmem:[#allocation2 + $0x250] sm:$0xff] }
  0x2b   :  { %1548 = vmatprep.subr.mxu1 %v164_v2  ;;  %1511 = vmatpush3.msra.mxu0 %v116_v3  ;;  %v465_v51 = vld [vmem:[#allocation2 + $0x358] sm:$0xff]  ;;  %v464_v55 = vld [vmem:[#allocation2 + $0x350] sm:$0xff]  ;;  %v447_v56 = vld [vmem:[#allocation2 + $0x2c8] sm:$0xff] }
  0x2c   :  { %1549 = vmatpush3.msra.mxu1 %v148_v4  ;;  %1512 = vmatprep.subr.mxu0 %v131_v9  ;;  %v479_v57 = vld [vmem:[#allocation2 + $0x3c8] sm:$0xff]  ;;  %v446_v60 = vld [vmem:[#allocation2 + $0x2c0] sm:$0xff]  ;;  %v445_v0 = vld [vmem:[#allocation2 + $0x2b8] sm:$0xff] }
  0x2d   :  { %1550 = vmatprep.subr.mxu1 %v163_v10  ;;  %1513 = vmatpush3.msra.mxu0 %v115_v13  ;;  %v431_v58 = vld [vmem:[#allocation2 + $0x248] sm:$0xff]  ;;  %v478_v61 = vld [vmem:[#allocation2 + $0x3c0] sm:$0xff]  ;;  %v477_v1 = vld [vmem:[#allocation2 + $0x3b8] sm:$0xff] }
  0x2e   :  { %1551 = vmatpush3.msra.mxu1 %v147_v14  ;;  %1514 = vmatprep.subr.mxu0 %v130_v17  ;;  %v463_v59 = vld [vmem:[#allocation2 + $0x348] sm:$0xff]  ;;  %v430_v62 = vld [vmem:[#allocation2 + $0x240] sm:$0xff]  ;;  %v429_v2 = vld [vmem:[#allocation2 + $0x238] sm:$0xff] }
  0x2f   :  { %1552 = vmatprep.subr.mxu1 %v162_v18  ;;  %1515 = vmatpush3.msra.mxu0 %v114_v23  ;;  %v462_v63 = vld [vmem:[#allocation2 + $0x340] sm:$0xff]  ;;  %v461_v3 = vld [vmem:[#allocation2 + $0x338] sm:$0xff]  ;;  %v444_v4 = vld [vmem:[#allocation2 + $0x2b0] sm:$0xff] }
  0x30   :  { %249 = vmatprep.mubr.f32.mxu0 %v98_v19  ;;  %1553 = vmatpush3.msra.mxu1 %v146_v25  ;;  %v476_v7 = vld [vmem:[#allocation2 + $0x3b0] sm:$0xff]  ;;  %v443_v10 = vld [vmem:[#allocation2 + $0x2a8] sm:$0xff]  ;;  %v442_v16 = vld [vmem:[#allocation2 + $0x2a0] sm:$0xff] }
  0x31   :  { %324 = vmatprep.mubr.f32.mxu1 %v112_v24  ;;  %250 = vmatmul.mubr.f32.vlgmr.msra.gmra.mxu0 %v1967_v52  ;;  %v448_v52 = vld [vmem:[#allocation2 + $0x2d0] sm:$0xff]  ;;  %v475_v12 = vld [vmem:[#allocation2 + $0x3a8] sm:$0xff]  ;;  %v474_v17 = vld [vmem:[#allocation2 + $0x3a0] sm:$0xff] }
  0x32   :  { %325 = vmatmul.mubr.f32.vlgmr.msra.gmra.mxu1 %v105_v26  ;;  %254 = vmatprep.mubr.f32.mxu0 %v99_v27  ;;  %v428_v8 = vld [vmem:[#allocation2 + $0x230] sm:$0xff]  ;;  %v427_v13 = vld [vmem:[#allocation2 + $0x228] sm:$0xff]  ;;  %v426_v18 = vld [vmem:[#allocation2 + $0x220] sm:$0xff] }
  0x33   :  { %329 = vmatprep.mubr.f32.mxu1 %v113_v28  ;;  %1560 = vmatprep.subr.mxu0 %v453_v31  ;;  %v460_v9 = vld [vmem:[#allocation2 + $0x330] sm:$0xff]  ;;  %v459_v14 = vld [vmem:[#allocation2 + $0x328] sm:$0xff]  ;;  %v458_v19 = vld [vmem:[#allocation2 + $0x320] sm:$0xff] }
  0x34   :  { %1598 = vmatprep.subr.mxu1 %v485_v32  ;;  %1561 = vmatpush3.msra.mxu0 %v437_v34  ;;  %v441_v21 = vld [vmem:[#allocation2 + $0x298] sm:$0xff]  ;;  %v440_v25 = vld [vmem:[#allocation2 + $0x290] sm:$0xff]  ;;  %v439_v29 = vld [vmem:[#allocation2 + $0x288] sm:$0xff] }
  0x35   :  { %255 = vmatmul.mubr.f32.gmra.mxu0 %v1972_v53  ;;  %1599 = vmatpush3.msra.mxu1 %v469_v35  ;;  %v480_v53 = vld [vmem:[#allocation2 + $0x3d0] sm:$0xff]  ;;  %v473_v22 = vld [vmem:[#allocation2 + $0x398] sm:$0xff]  ;;  %v423_v31 = vld [vmem:[#allocation2 + $0x208] sm:$0xff] }
  0x36   :  { %330 = vmatmul.mubr.f32.gmra.mxu1 %v106_v30  ;;  %1562 = vmatprep.subr.mxu0 %v452_v36  ;;  %v425_v23 = vld [vmem:[#allocation2 + $0x218] sm:$0xff]  ;;  %v472_v26 = vld [vmem:[#allocation2 + $0x390] sm:$0xff]  ;;  %v471_v30 = vld [vmem:[#allocation2 + $0x388] sm:$0xff] }
  0x37   :  { %1600 = vmatprep.subr.mxu1 %v484_v37  ;;  %1563 = vmatpush3.msra.mxu0 %v436_v38  ;;  %v457_v24 = vld [vmem:[#allocation2 + $0x318] sm:$0xff]  ;;  %v424_v27 = vld [vmem:[#allocation2 + $0x210] sm:$0xff]  ;;  %v455_v32 = vld [vmem:[#allocation2 + $0x308] sm:$0xff] }
  0x38   :  { %1601 = vmatpush3.msra.mxu1 %v468_v39  ;;  %1564 = vmatprep.subr.mxu0 %v451_v40  ;;  %v456_v28 = vld [vmem:[#allocation2 + $0x310] sm:$0xff]  ;;  %v438_v34 = vld [vmem:[#allocation2 + $0x280] sm:$0xff] }
  0x39   :  { %1602 = vmatprep.subr.mxu1 %v483_v41  ;;  %1565 = vmatpush3.msra.mxu0 %v435_v42  ;;  %v470_v35 = vld [vmem:[#allocation2 + $0x380] sm:$0xff] }
  0x3a   :  { %1603 = vmatpush3.msra.mxu1 %v467_v43  ;;  %1566 = vmatprep.subr.mxu0 %v450_v44  ;;  %v422_v36 = vld [vmem:[#allocation2 + $0x200] sm:$0xff] }
  0x3b   :  { %1604 = vmatprep.subr.mxu1 %v482_v45  ;;  %1567 = vmatpush3.msra.mxu0 %v434_v46  ;;  %v454_v37 = vld [vmem:[#allocation2 + $0x300] sm:$0xff] }
  0x3c   :  { %1605 = vmatpush3.msra.mxu1 %v466_v47  ;;  %1568 = vmatprep.subr.mxu0 %v449_v48  ;;  %v1460_v40 = vld [vmem:[%s2222_s2] ss:$0 sm:$0xff] }
  0x3d   :  { %1606 = vmatprep.subr.mxu1 %v481_v49  ;;  %1569 = vmatpush3.msra.mxu0 %v433_v50 }
  0x3e   :  { %1607 = vmatpush3.msra.mxu1 %v465_v51  ;;  %1570 = vmatprep.subr.mxu0 %v448_v52 }
  0x3f   :  { %1608 = vmatprep.subr.mxu1 %v480_v53  ;;  %1571 = vmatpush3.msra.mxu0 %v432_v54 }
  0x40   :  { %1609 = vmatpush3.msra.mxu1 %v464_v55  ;;  %1572 = vmatprep.subr.mxu0 %v447_v56 }
  0x41   :  { %1610 = vmatprep.subr.mxu1 %v479_v57  ;;  %1573 = vmatpush3.msra.mxu0 %v431_v58 }
  0x42   :  { %1611 = vmatpush3.msra.mxu1 %v463_v59  ;;  %1574 = vmatprep.subr.mxu0 %v446_v60 }
  0x43   :  { %1612 = vmatprep.subr.mxu1 %v478_v61  ;;  %1575 = vmatpush3.msra.mxu0 %v430_v62 }
  0x44   :  { %1613 = vmatpush3.msra.mxu1 %v462_v63  ;;  %1576 = vmatprep.subr.mxu0 %v445_v0  ;;  %v354_v0 = vld [vmem:[%s2225_s5] sm:$0x1] }
  0x45   :  { %1614 = vmatprep.subr.mxu1 %v477_v1  ;;  %1577 = vmatpush3.msra.mxu0 %v429_v2 }
  0x46   :  { %1615 = vmatpush3.msra.mxu1 %v461_v3  ;;  %1578 = vmatprep.subr.mxu0 %v444_v4 }
  0x47   :  { %1616 = vmatprep.subr.mxu1 %v476_v7  ;;  %1579 = vmatpush3.msra.mxu0 %v428_v8  ;;  %v355_v7 = vmul.f32 2.0, %v354_v0  ;;  %v356_v8 = vmul.f32 %v354_v0, %v354_v0 }
  0x48   :  { %1617 = vmatpush3.msra.mxu1 %v460_v9  ;;  %1580 = vmatprep.subr.mxu0 %v443_v10 }
  0x49   :  { %1618 = vmatprep.subr.mxu1 %v475_v12  ;;  %1581 = vmatpush3.msra.mxu0 %v427_v13 }
  0x4a   :  { %1619 = vmatpush3.msra.mxu1 %v459_v14  ;;  %1582 = vmatprep.subr.mxu0 %v442_v16  ;;  %v357_v14 = vsub.f32 %v355_v7, %v356_v8  ;;  %v762_v7 = vld [vmem:[#allocation2 + $0x4e8] sm:$0xff] }
  0x4b   :  { %1620 = vmatprep.subr.mxu1 %v474_v17  ;;  %1583 = vmatpush3.msra.mxu0 %v426_v18  ;;  %v794_v8 = vld [vmem:[#allocation2 + $0x5e8] sm:$0xff] }
  0x4c   :  { %1621 = vmatpush3.msra.mxu1 %v458_v19  ;;  %1584 = vmatprep.subr.mxu0 %v441_v21 }
  0x4d   :  { %1622 = vmatprep.subr.mxu1 %v473_v22  ;;  %1585 = vmatpush3.msra.mxu0 %v425_v23 }
  0x4e   :  { %1623 = vmatpush3.msra.mxu1 %v457_v24  ;;  %1586 = vmatprep.subr.mxu0 %v440_v25  ;;  %v2037_v24 = vsub.s32 0, %v1958_v33  ;;  %v1356_v33 = vld [vmem:[%s2226_s6 + $0x70] sm:$0xff] }
  0x4f   :  { %1624 = vmatprep.subr.mxu1 %v472_v26  ;;  %1587 = vmatpush3.msra.mxu0 %v424_v27 }
  0x50   :  { %1625 = vmatpush3.msra.mxu1 %v456_v28  ;;  %1588 = vmatprep.subr.mxu0 %v439_v29  ;;  %v1461_v28 = vld [vmem:[%s2223_s3] ss:$0 sm:$0xff] }
  0x51   :  { %1626 = vmatprep.subr.mxu1 %v471_v30  ;;  %1589 = vmatpush3.msra.mxu0 %v423_v31 }
  0x52   :  { %1627 = vmatpush3.msra.mxu1 %v455_v32  ;;  %1590 = vmatprep.subr.mxu0 %v438_v34  ;;  %v1462_v34 = vld [vmem:[%s2224_s4] ss:$0 sm:$0xff] }
  0x53   :  { %1628 = vmatprep.subr.mxu1 %v470_v35  ;;  %1591 = vmatpush3.msra.mxu0 %v422_v36 }
  0x54   :  { %1629 = vmatpush3.msra.mxu1 %v454_v37 }
  0xf1   :  { %v1516_v38 = vpop.f32.mrf.mxu0 }
  0xf2   :  { %v1554_v39 = vpop.f32.mrf.mxu1 }
  0xf3   :  { %v1517_v41 = vpop.f32.mrf.mxu0 }
  0xf4   :  { %v1555_v42 = vpop.f32.mrf.mxu1  ;;  %v1518_v43 = vadd.f32 %v1517_v41, %v1516_v38 }
  0xf5   :  { %v1519_v44 = vpop.f32.mrf.mxu0  ;;  %v1556_v49 = vadd.f32 %v1555_v42, %v1554_v39 }
  0xf6   :  { %v1557_v45 = vpop.f32.mrf.mxu1  ;;  %v252_v46 = vadd.f32 %v1518_v43, %v1460_v40 }
  0xf7   :  { %v1520_v47 = vpop.f32.mrf.mxu0 }
  0xf8   :  { %v1558_v48 = vpop.f32.mrf.mxu1  ;;  %v1521_v50 = vadd.f32 %v1520_v47, %v1519_v44  ;;  %v327_v51 = vadd.f32 %v1556_v49, %v252_v46 }
  0xf9   :  { %v1559_v53 = vadd.f32 %v1558_v48, %v1557_v45 }
  0xfa   :  { %v257_v52 = vadd.f32 %v1521_v50, %v1460_v40  ;;  %v344_v55 = vmul.f32 %v327_v51, %v327_v51 }
  0xfc   :  { %v332_v54 = vadd.f32 %v1559_v53, %v257_v52 }
  0xfe   :  { %v335_v56 = vadd.f32 %v332_v54, %v327_v51  ;;  %v345_v57 = vmul.f32 %v332_v54, %v332_v54 }
 0x100   :  { %v336_v58 = vrot.slane %v335_v56, 4  ;;  %v346_v59 = vadd.f32 %v345_v57, %v344_v55 }
 0x102   :  { %v337_v60 = vadd.f32 %v336_v58, %v335_v56  ;;  %v347_v61 = vrot.slane %v346_v59, 4 }
 0x104   :  { %v338_v62 = vrot.slane %v337_v60, 2  ;;  %v348_v63 = vadd.f32 %v347_v61, %v346_v59  ;;  %v764_v61 = vld [vmem:[#allocation2 + $0x4f8] sm:$0xff] }
 0x105   :  { %1636 = vmatprep.subr.mxu0 %v764_v61  ;;  %v782_v61 = vld [vmem:[#allocation2 + $0x588] sm:$0xff] }
 0x106   :  { %v339_v1 = vadd.f32 %v338_v62, %v337_v60  ;;  %v349_v2 = vrot.slane %v348_v63, 2  ;;  %v796_v62 = vld [vmem:[#allocation2 + $0x5f8] sm:$0xff] }
 0x107   :  { %1674 = vmatprep.subr.mxu1 %v796_v62  ;;  %v734_v62 = vld [vmem:[#allocation2 + $0x408] sm:$0xff] }
 0x108   :  { %v340_v3 = vrot.slane %v339_v1, 1  ;;  %v350_v4 = vadd.f32 %v349_v2, %v348_v63  ;;  %v748_v63 = vld [vmem:[#allocation2 + $0x478] sm:$0xff]  ;;  %v795_v2 = vld [vmem:[#allocation2 + $0x5f0] sm:$0xff] }
 0x10a   :  { %v341_v9 = vadd.f32 %v340_v3, %v339_v1  ;;  %v351_v10 = vrot.slane %v350_v4, 1  ;;  %v763_v1 = vld [vmem:[#allocation2 + $0x4f0] sm:$0xff] }
 0x10b   :  { %v747_v3 = vld [vmem:[#allocation2 + $0x470] sm:$0xff] }
 0x10c   :  { %v343_v12 = vmul.f32 0.0625, %v341_v9  ;;  %v352_v13 = vadd.f32 %v351_v10, %v350_v4  ;;  %v779_v4 = vld [vmem:[#allocation2 + $0x570] sm:$0xff]  ;;  %v746_v9 = vld [vmem:[#allocation2 + $0x468] sm:$0xff] }
 0x10d   :  { %v778_v10 = vld [vmem:[#allocation2 + $0x568] sm:$0xff] }
 0x10e   :  { %v358_v16 = vmul.f32 %v343_v12, %v343_v12  ;;  %v353_v17 = vmul.f32 0.0625, %v352_v13  ;;  %v365_v23 = vmul.f32 %v354_v0, %v343_v12  ;;  %v780_v0 = vld [vmem:[#allocation2 + $0x578] sm:$0xff]  ;;  %v761_v12 = vld [vmem:[#allocation2 + $0x4e0] sm:$0xff] }
 0x10f   :  { %v793_v13 = vld [vmem:[#allocation2 + $0x5e0] sm:$0xff] }
 0x110   :  { %v359_v18 = vmul.f32 %v358_v16, %v357_v14  ;;  %v370_v25 = vrot.slane %v365_v23, %v2037_v24  ;;  %v745_v14 = vld [vmem:[#allocation2 + $0x460] sm:$0xff]  ;;  %v791_v23 = vld [vmem:[#allocation2 + $0x5d0] sm:$0xff] }
 0x111   :  { %v777_v16 = vld [vmem:[#allocation2 + $0x560] sm:$0xff] }
 0x112   :  { %v360_v19 = vsub.f32 %v353_v17, %v359_v18  ;;  %v372_v26 = vsub.f32 %v327_v51, %v370_v25  ;;  %v373_v27 = vsub.f32 %v332_v54, %v370_v25  ;;  %v760_v17 = vld [vmem:[#allocation2 + $0x4d8] sm:$0xff]  ;;  %v743_v25 = vld [vmem:[#allocation2 + $0x450] sm:$0xff] }
 0x113   :  { %v792_v18 = vld [vmem:[#allocation2 + $0x5d8] sm:$0xff] }
 0x114   :  { %v361_v21 = vmax.f32 %v360_v19, 0.0  ;;  %v380_v30 = vmul.f32 %v1461_v28, %v372_v26  ;;  %v381_v31 = vmul.f32 %v1461_v28, %v373_v27  ;;  %v744_v19 = vld [vmem:[#allocation2 + $0x458] sm:$0xff]  ;;  %v775_v26 = vld [vmem:[#allocation2 + $0x550] sm:$0xff]  ;;  %v758_v27 = vld [vmem:[#allocation2 + $0x4c8] sm:$0xff] }
 0x115   :  { %v790_v28 = vld [vmem:[#allocation2 + $0x5c8] sm:$0xff] }
 0x116   :  { %v362_v22 = vadd.f32 1e-05, %v361_v21  ;;  %v776_v21 = vld [vmem:[#allocation2 + $0x558] sm:$0xff] }
 0x118   :  { %1846 = vrsqrt.f32 %v362_v22  ;;  %v759_v22 = vld [vmem:[#allocation2 + $0x4d0] sm:$0xff] }
 0x125   :  { %v1847_v29 = vpop.eup %1846 }
 0x126   :  { %v385_v32 = vrot.slane %v1847_v29, %v2037_v24  ;;  %v742_v29 = vld [vmem:[#allocation2 + $0x448] sm:$0xff] }
 0x128   :  { %v386_v35 = vmul.f32 %v385_v32, %v380_v30  ;;  %v387_v36 = vmul.f32 %v385_v32, %v381_v31  ;;  %v774_v30 = vld [vmem:[#allocation2 + $0x548] sm:$0xff]  ;;  %v757_v31 = vld [vmem:[#allocation2 + $0x4c0] sm:$0xff] }
 0x129   :  { %v789_v32 = vld [vmem:[#allocation2 + $0x5c0] sm:$0xff] }
 0x12a   :  { %v395_v37 = vadd.f32 %v1462_v34, %v386_v35  ;;  %v396_v38 = vadd.f32 %v1462_v34, %v387_v36  ;;  %v741_v34 = vld [vmem:[#allocation2 + $0x440] sm:$0xff]  ;;  %v756_v36 = vld [vmem:[#allocation2 + $0x4b8] sm:$0xff] }
 0x12b   :  { %v773_v35 = vld [vmem:[#allocation2 + $0x540] sm:$0xff] }
 0x12c   :  { %v400_v39 = vmul.f32 0.1, %v396_v38  ;;  %vm397_vm7 = vcmp.gt.f32.partialorder %v395_v37, 0.0  ;;  %vm398_vm8 = vcmp.gt.f32.partialorder %v396_v38, 0.0  ;;  %v399_v40 = vmul.f32 0.1, %v395_v37 }
 0x12e   :  { %v401_v41 = vsel %vm397_vm7, %v395_v37, %v399_v40  ;;  %v402_v42 = vsel %vm398_vm8, %v396_v38, %v400_v39  ;;  %v788_v37 = vld [vmem:[#allocation2 + $0x5b8] sm:$0xff]  ;;  %v755_v40 = vld [vmem:[#allocation2 + $0x4b0] sm:$0xff] }
 0x12f   :  { %v403_v43 = vrot.slane %v401_v41, 7  ;;  %v404_v44 = vrot.slane %v402_v42, 7  ;;  %v415_v45 = vrot.slane %v401_v41, 5  ;;  %v416_v46 = vrot.slane %v402_v42, 5  ;;  %v740_v38 = vld [vmem:[#allocation2 + $0x438] sm:$0xff] }
 0x130   :  { %v409_v47 = vrot.slane %v401_v41, 6  ;;  %v410_v48 = vrot.slane %v402_v42, 6  ;;  %v772_v39 = vld [vmem:[#allocation2 + $0x538] sm:$0xff] }
 0x131   :  { %v406_v49 = vsel %vm95_vm1, %v404_v44, %v403_v43  ;;  %v418_v50 = vsel %vm109_vm3, %v416_v46, %v415_v45  ;;  %v405_v51 = vsel %vm95_vm1, %v403_v43, %v404_v44  ;;  %v417_v52 = vsel %vm109_vm3, %v415_v45, %v416_v46  ;;  %v771_v43 = vld [vmem:[#allocation2 + $0x530] sm:$0xff]  ;;  %v754_v44 = vld [vmem:[#allocation2 + $0x4a8] sm:$0xff] }
 0x132   :  { %v407_v53 = vmul.f32 %v406_v49, %v1989_v6  ;;  %v419_v54 = vmul.f32 %v418_v50, %v2000_v11  ;;  %v412_v55 = vsel %vm102_vm5, %v410_v48, %v409_v47  ;;  %v408_v57 = vmul.f32 %v405_v51, %v2015_v20  ;;  %v786_v45 = vld [vmem:[#allocation2 + $0x5a8] sm:$0xff]  ;;  %v785_v49 = vld [vmem:[#allocation2 + $0x5a0] sm:$0xff] }
 0x133   :  { %v413_v56 = vmul.f32 %v412_v55, %v2007_v15  ;;  %v420_v58 = vmul.f32 %v417_v52, %v2015_v20  ;;  %v411_v59 = vsel %vm102_vm5, %v409_v47, %v410_v48  ;;  %v738_v46 = vld [vmem:[#allocation2 + $0x428] sm:$0xff]  ;;  %v753_v48 = vld [vmem:[#allocation2 + $0x4a0] sm:$0xff]  ;;  %v752_v52 = vld [vmem:[#allocation2 + $0x498] sm:$0xff] }
 0x134   :  { %558 = vmatprep.mubr.f32.mxu0 %v407_v53  ;;  %633 = vmatprep.mubr.f32.mxu1 %v419_v54  ;;  %v414_v60 = vmul.f32 %v411_v59, %v2015_v20  ;;  %v770_v47 = vld [vmem:[#allocation2 + $0x528] sm:$0xff]  ;;  %v737_v50 = vld [vmem:[#allocation2 + $0x420] sm:$0xff]  ;;  %v784_v53 = vld [vmem:[#allocation2 + $0x598] sm:$0xff] }
 0x135   :  { %559 = vmatmul.mubr.f32.vlgmr.msra.gmra.mxu0 %v401_v41  ;;  %634 = vmatmul.mubr.f32.vlgmr.msra.gmra.mxu1 %v413_v56  ;;  %v787_v41 = vld [vmem:[#allocation2 + $0x5b0] sm:$0xff]  ;;  %v769_v51 = vld [vmem:[#allocation2 + $0x520] sm:$0xff]  ;;  %v736_v54 = vld [vmem:[#allocation2 + $0x418] sm:$0xff] }
 0x136   :  { %563 = vmatprep.mubr.f32.mxu0 %v408_v57  ;;  %638 = vmatprep.mubr.f32.mxu1 %v420_v58  ;;  %v768_v55 = vld [vmem:[#allocation2 + $0x518] sm:$0xff]  ;;  %v751_v56 = vld [vmem:[#allocation2 + $0x490] sm:$0xff] }
 0x137   :  { %1637 = vmatpush3.msra.mxu0 %v748_v63  ;;  %1675 = vmatpush3.msra.mxu1 %v780_v0  ;;  %v783_v57 = vld [vmem:[#allocation2 + $0x590] sm:$0xff]  ;;  %v766_v63 = vld [vmem:[#allocation2 + $0x508] sm:$0xff]  ;;  %v749_v0 = vld [vmem:[#allocation2 + $0x480] sm:$0xff] }
 0x138   :  { %1638 = vmatprep.subr.mxu0 %v763_v1  ;;  %1676 = vmatprep.subr.mxu1 %v795_v2  ;;  %v735_v58 = vld [vmem:[#allocation2 + $0x410] sm:$0xff]  ;;  %v781_v1 = vld [vmem:[#allocation2 + $0x580] sm:$0xff] }
 0x139   :  { %564 = vmatmul.mubr.f32.gmra.mxu0 %v402_v42  ;;  %639 = vmatmul.mubr.f32.gmra.mxu1 %v414_v60  ;;  %v739_v42 = vld [vmem:[#allocation2 + $0x430] sm:$0xff]  ;;  %v750_v60 = vld [vmem:[#allocation2 + $0x488] sm:$0xff]  ;;  %v733_v2 = vld [vmem:[#allocation2 + $0x400] sm:$0xff] }
 0x13a   :  { %1639 = vmatpush3.msra.mxu0 %v747_v3  ;;  %1677 = vmatpush3.msra.mxu1 %v779_v4  ;;  %v767_v59 = vld [vmem:[#allocation2 + $0x510] sm:$0xff]  ;;  %v765_v3 = vld [vmem:[#allocation2 + $0x500] sm:$0xff] }
 0x13b   :  { %1640 = vmatprep.subr.mxu0 %v762_v7  ;;  %1678 = vmatprep.subr.mxu1 %v794_v8  ;;  %v1464_v8 = vld [vmem:[%s2222_s2 + $0x1] ss:$0 sm:$0xff] }
 0x13c   :  { %1641 = vmatpush3.msra.mxu0 %v746_v9  ;;  %1679 = vmatpush3.msra.mxu1 %v778_v10 }
 0x13d   :  { %1642 = vmatprep.subr.mxu0 %v761_v12  ;;  %1680 = vmatprep.subr.mxu1 %v793_v13 }
 0x13e   :  { %1643 = vmatpush3.msra.mxu0 %v745_v14  ;;  %1681 = vmatpush3.msra.mxu1 %v777_v16 }
 0x13f   :  { %1644 = vmatprep.subr.mxu0 %v760_v17  ;;  %1682 = vmatprep.subr.mxu1 %v792_v18 }
 0x140   :  { %1645 = vmatpush3.msra.mxu0 %v744_v19  ;;  %1683 = vmatpush3.msra.mxu1 %v776_v21 }
 0x141   :  { %1646 = vmatprep.subr.mxu0 %v759_v22  ;;  %1684 = vmatprep.subr.mxu1 %v791_v23 }
 0x142   :  { %1647 = vmatpush3.msra.mxu0 %v743_v25  ;;  %1685 = vmatpush3.msra.mxu1 %v775_v26 }
 0x143   :  { %1648 = vmatprep.subr.mxu0 %v758_v27  ;;  %1686 = vmatprep.subr.mxu1 %v790_v28 }
 0x144   :  { %1649 = vmatpush3.msra.mxu0 %v742_v29  ;;  %1687 = vmatpush3.msra.mxu1 %v774_v30 }
 0x145   :  { %1650 = vmatprep.subr.mxu0 %v757_v31  ;;  %1688 = vmatprep.subr.mxu1 %v789_v32 }
 0x146   :  { %1651 = vmatpush3.msra.mxu0 %v741_v34  ;;  %1689 = vmatpush3.msra.mxu1 %v773_v35 }
 0x147   :  { %1652 = vmatprep.subr.mxu0 %v756_v36  ;;  %1690 = vmatprep.subr.mxu1 %v788_v37  ;;  %v1465_v37 = vld [vmem:[%s2225_s5 + $0x1] sm:$0x1] }
 0x148   :  { %1653 = vmatpush3.msra.mxu0 %v740_v38  ;;  %1691 = vmatpush3.msra.mxu1 %v772_v39 }
 0x149   :  { %1654 = vmatprep.subr.mxu0 %v755_v40  ;;  %1692 = vmatprep.subr.mxu1 %v787_v41 }
 0x14a   :  { %1655 = vmatpush3.msra.mxu0 %v739_v42  ;;  %1693 = vmatpush3.msra.mxu1 %v771_v43  ;;  %v664_v42 = vmul.f32 2.0, %v1465_v37  ;;  %v665_v43 = vmul.f32 %v1465_v37, %v1465_v37 }
 0x14b   :  { %1656 = vmatprep.subr.mxu0 %v754_v44  ;;  %1694 = vmatprep.subr.mxu1 %v786_v45 }
 0x14c   :  { %1657 = vmatpush3.msra.mxu0 %v738_v46  ;;  %1695 = vmatpush3.msra.mxu1 %v770_v47 }
 0x14d   :  { %1658 = vmatprep.subr.mxu0 %v753_v48  ;;  %1696 = vmatprep.subr.mxu1 %v785_v49  ;;  %v666_v48 = vsub.f32 %v664_v42, %v665_v43  ;;  %v1073_v42 = vld [vmem:[#allocation2 + $0x6e8] sm:$0xff] }
 0x14e   :  { %1659 = vmatpush3.msra.mxu0 %v737_v50  ;;  %1697 = vmatpush3.msra.mxu1 %v769_v51  ;;  %v1105_v43 = vld [vmem:[#allocation2 + $0x7e8] sm:$0xff] }
 0x14f   :  { %1660 = vmatprep.subr.mxu0 %v752_v52  ;;  %1698 = vmatprep.subr.mxu1 %v784_v53 }
 0x150   :  { %1661 = vmatpush3.msra.mxu0 %v736_v54  ;;  %1699 = vmatpush3.msra.mxu1 %v768_v55 }
 0x151   :  { %1662 = vmatprep.subr.mxu0 %v751_v56  ;;  %1700 = vmatprep.subr.mxu1 %v783_v57 }
 0x152   :  { %1663 = vmatpush3.msra.mxu0 %v735_v58  ;;  %1701 = vmatpush3.msra.mxu1 %v767_v59  ;;  %v1467_v59 = vld [vmem:[%s2223_s3 + $0x1] ss:$0 sm:$0xff] }
 0x153   :  { %1664 = vmatprep.subr.mxu0 %v750_v60  ;;  %1702 = vmatprep.subr.mxu1 %v782_v61 }
 0x154   :  { %1665 = vmatpush3.msra.mxu0 %v734_v62  ;;  %1703 = vmatpush3.msra.mxu1 %v766_v63 }
 0x155   :  { %1666 = vmatprep.subr.mxu0 %v749_v0  ;;  %1704 = vmatprep.subr.mxu1 %v781_v1  ;;  %v1469_v0 = vld [vmem:[%s2224_s4 + $0x1] ss:$0 sm:$0xff] }
 0x156   :  { %1667 = vmatpush3.msra.mxu0 %v733_v2  ;;  %1705 = vmatpush3.msra.mxu1 %v765_v3 }
 0x1f5   :  { %v1592_v4 = vpop.f32.mrf.mxu0  ;;  %v1630_v7 = vpop.f32.mrf.mxu1 }
 0x1f7   :  { %v1593_v9 = vpop.f32.mrf.mxu0  ;;  %v1631_v10 = vpop.f32.mrf.mxu1 }
 0x1f8   :  { %v1594_v12 = vadd.f32 %v1593_v9, %v1592_v4  ;;  %v1632_v19 = vadd.f32 %v1631_v10, %v1630_v7 }
 0x1f9   :  { %v1595_v13 = vpop.f32.mrf.mxu0  ;;  %v1633_v14 = vpop.f32.mrf.mxu1 }
 0x1fa   :  { %v561_v16 = vadd.f32 %v1594_v12, %v1464_v8 }
 0x1fb   :  { %v1596_v17 = vpop.f32.mrf.mxu0  ;;  %v1634_v18 = vpop.f32.mrf.mxu1 }
 0x1fc   :  { %v1597_v21 = vadd.f32 %v1596_v17, %v1595_v13  ;;  %v636_v22 = vadd.f32 %v1632_v19, %v561_v16  ;;  %v1635_v25 = vadd.f32 %v1634_v18, %v1633_v14 }
 0x1fe   :  { %v566_v23 = vadd.f32 %v1597_v21, %v1464_v8  ;;  %v652_v27 = vmul.f32 %v636_v22, %v636_v22 }
 0x200   :  { %v641_v26 = vadd.f32 %v1635_v25, %v566_v23 }
 0x202   :  { %v644_v28 = vadd.f32 %v641_v26, %v636_v22  ;;  %v653_v29 = vmul.f32 %v641_v26, %v641_v26 }
 0x204   :  { %v645_v30 = vrot.slane %v644_v28, 4  ;;  %v654_v31 = vadd.f32 %v653_v29, %v652_v27 }
 0x206   :  { %v646_v32 = vadd.f32 %v645_v30, %v644_v28  ;;  %v655_v34 = vrot.slane %v654_v31, 4 }
 0x208   :  { %v647_v35 = vrot.slane %v646_v32, 2  ;;  %v656_v36 = vadd.f32 %v655_v34, %v654_v31  ;;  %v1075_v34 = vld [vmem:[#allocation2 + $0x6f8] sm:$0xff] }
 0x209   :  { %1712 = vmatprep.subr.mxu0 %v1075_v34  ;;  %v1093_v34 = vld [vmem:[#allocation2 + $0x788] sm:$0xff] }
 0x20a   :  { %v648_v38 = vadd.f32 %v647_v35, %v646_v32  ;;  %v657_v39 = vrot.slane %v656_v36, 2  ;;  %v1107_v35 = vld [vmem:[#allocation2 + $0x7f8] sm:$0xff] }
 0x20b   :  { %1750 = vmatprep.subr.mxu1 %v1107_v35  ;;  %v1045_v35 = vld [vmem:[#allocation2 + $0x608] sm:$0xff] }
 0x20c   :  { %v649_v40 = vrot.slane %v648_v38, 1  ;;  %v658_v41 = vadd.f32 %v657_v39, %v656_v36  ;;  %v1059_v36 = vld [vmem:[#allocation2 + $0x678] sm:$0xff]  ;;  %v1106_v39 = vld [vmem:[#allocation2 + $0x7f0] sm:$0xff] }
 0x20e   :  { %v650_v44 = vadd.f32 %v649_v40, %v648_v38  ;;  %v659_v45 = vrot.slane %v658_v41, 1  ;;  %v1074_v38 = vld [vmem:[#allocation2 + $0x6f0] sm:$0xff] }
 0x20f   :  { %v1058_v40 = vld [vmem:[#allocation2 + $0x670] sm:$0xff] }
 0x210   :  { %v651_v46 = vmul.f32 0.0625, %v650_v44  ;;  %v660_v47 = vadd.f32 %v659_v45, %v658_v41  ;;  %v1090_v41 = vld [vmem:[#allocation2 + $0x770] sm:$0xff]  ;;  %v1057_v44 = vld [vmem:[#allocation2 + $0x668] sm:$0xff] }
 0x211   :  { %v1089_v45 = vld [vmem:[#allocation2 + $0x768] sm:$0xff] }
 0x212   :  { %v667_v49 = vmul.f32 %v651_v46, %v651_v46  ;;  %v661_v50 = vmul.f32 0.0625, %v660_v47  ;;  %v675_v55 = vmul.f32 %v1465_v37, %v651_v46  ;;  %v1091_v37 = vld [vmem:[#allocation2 + $0x778] sm:$0xff]  ;;  %v1072_v46 = vld [vmem:[#allocation2 + $0x6e0] sm:$0xff] }
 0x213   :  { %v1104_v47 = vld [vmem:[#allocation2 + $0x7e0] sm:$0xff] }
 0x214   :  { %v668_v51 = vmul.f32 %v667_v49, %v666_v48  ;;  %v680_v56 = vrot.slane %v675_v55, %v2037_v24  ;;  %v1056_v48 = vld [vmem:[#allocation2 + $0x660] sm:$0xff]  ;;  %v1102_v55 = vld [vmem:[#allocation2 + $0x7d0] sm:$0xff] }
 0x215   :  { %v1088_v49 = vld [vmem:[#allocation2 + $0x760] sm:$0xff] }
 0x216   :  { %v669_v52 = vsub.f32 %v661_v50, %v668_v51  ;;  %v682_v57 = vsub.f32 %v636_v22, %v680_v56  ;;  %v683_v58 = vsub.f32 %v641_v26, %v680_v56  ;;  %v1071_v50 = vld [vmem:[#allocation2 + $0x6d8] sm:$0xff]  ;;  %v1054_v56 = vld [vmem:[#allocation2 + $0x650] sm:$0xff] }
 0x217   :  { %v1103_v51 = vld [vmem:[#allocation2 + $0x7d8] sm:$0xff] }
 0x218   :  { %v670_v53 = vmax.f32 %v669_v52, 0.0  ;;  %v690_v61 = vmul.f32 %v1467_v59, %v682_v57  ;;  %v691_v62 = vmul.f32 %v1467_v59, %v683_v58  ;;  %v1055_v52 = vld [vmem:[#allocation2 + $0x658] sm:$0xff]  ;;  %v1086_v57 = vld [vmem:[#allocation2 + $0x750] sm:$0xff]  ;;  %v1069_v58 = vld [vmem:[#allocation2 + $0x6c8] sm:$0xff] }
 0x219   :  { %v1101_v59 = vld [vmem:[#allocation2 + $0x7c8] sm:$0xff] }
 0x21a   :  { %v671_v54 = vadd.f32 1e-05, %v670_v53  ;;  %v1087_v53 = vld [vmem:[#allocation2 + $0x758] sm:$0xff] }
 0x21c   :  { %1848 = vrsqrt.f32 %v671_v54  ;;  %v1070_v54 = vld [vmem:[#allocation2 + $0x6d0] sm:$0xff] }
 0x229   :  { %v1849_v60 = vpop.eup %1848 }
 0x22a   :  { %v695_v63 = vrot.slane %v1849_v60, %v2037_v24  ;;  %v1053_v60 = vld [vmem:[#allocation2 + $0x648] sm:$0xff] }
 0x22c   :  { %v696_v1 = vmul.f32 %v695_v63, %v690_v61  ;;  %v697_v2 = vmul.f32 %v695_v63, %v691_v62  ;;  %v1085_v61 = vld [vmem:[#allocation2 + $0x748] sm:$0xff]  ;;  %v1068_v62 = vld [vmem:[#allocation2 + $0x6c0] sm:$0xff] }
 0x22d   :  { %v1100_v63 = vld [vmem:[#allocation2 + $0x7c0] sm:$0xff] }
 0x22e   :  { %v706_v3 = vadd.f32 %v1469_v0, %v696_v1  ;;  %v707_v4 = vadd.f32 %v1469_v0, %v697_v2  ;;  %v1052_v0 = vld [vmem:[#allocation2 + $0x640] sm:$0xff]  ;;  %v1067_v2 = vld [vmem:[#allocation2 + $0x6b8] sm:$0xff] }
 0x22f   :  { %v1084_v1 = vld [vmem:[#allocation2 + $0x740] sm:$0xff] }
 0x230   :  { %v711_v7 = vmul.f32 0.1, %v707_v4  ;;  %vm708_vm9 = vcmp.gt.f32.partialorder %v706_v3, 0.0  ;;  %vm709_vm10 = vcmp.gt.f32.partialorder %v707_v4, 0.0  ;;  %v710_v8 = vmul.f32 0.1, %v706_v3 }
 0x232   :  { %v712_v9 = vsel %vm708_vm9, %v706_v3, %v710_v8  ;;  %v713_v10 = vsel %vm709_vm10, %v707_v4, %v711_v7  ;;  %v1099_v3 = vld [vmem:[#allocation2 + $0x7b8] sm:$0xff]  ;;  %v1066_v8 = vld [vmem:[#allocation2 + $0x6b0] sm:$0xff] }
 0x233   :  { %v714_v12 = vrot.slane %v712_v9, 7  ;;  %v715_v13 = vrot.slane %v713_v10, 7  ;;  %v726_v14 = vrot.slane %v712_v9, 5  ;;  %v727_v16 = vrot.slane %v713_v10, 5  ;;  %v1051_v4 = vld [vmem:[#allocation2 + $0x638] sm:$0xff] }
 0x234   :  { %v720_v17 = vrot.slane %v712_v9, 6  ;;  %v721_v18 = vrot.slane %v713_v10, 6  ;;  %v1083_v7 = vld [vmem:[#allocation2 + $0x738] sm:$0xff] }
 0x235   :  { %v717_v19 = vsel %vm95_vm1, %v715_v13, %v714_v12  ;;  %v729_v21 = vsel %vm109_vm3, %v727_v16, %v726_v14  ;;  %v716_v22 = vsel %vm95_vm1, %v714_v12, %v715_v13  ;;  %v728_v23 = vsel %vm109_vm3, %v726_v14, %v727_v16  ;;  %v1082_v12 = vld [vmem:[#allocation2 + $0x730] sm:$0xff]  ;;  %v1065_v13 = vld [vmem:[#allocation2 + $0x6a8] sm:$0xff] }
 0x236   :  { %v718_v25 = vmul.f32 %v717_v19, %v1989_v6  ;;  %v730_v26 = vmul.f32 %v729_v21, %v2000_v11  ;;  %v723_v27 = vsel %vm102_vm5, %v721_v18, %v720_v17  ;;  %v719_v29 = vmul.f32 %v716_v22, %v2015_v20  ;;  %v1097_v14 = vld [vmem:[#allocation2 + $0x7a8] sm:$0xff]  ;;  %v1096_v19 = vld [vmem:[#allocation2 + $0x7a0] sm:$0xff] }
 0x237   :  { %v724_v28 = vmul.f32 %v723_v27, %v2007_v15  ;;  %v731_v30 = vmul.f32 %v728_v23, %v2015_v20  ;;  %v722_v31 = vsel %vm102_vm5, %v720_v17, %v721_v18  ;;  %v1049_v16 = vld [vmem:[#allocation2 + $0x628] sm:$0xff]  ;;  %v1064_v18 = vld [vmem:[#allocation2 + $0x6a0] sm:$0xff]  ;;  %v1063_v23 = vld [vmem:[#allocation2 + $0x698] sm:$0xff] }
 0x238   :  { %869 = vmatprep.mubr.f32.mxu0 %v718_v25  ;;  %944 = vmatprep.mubr.f32.mxu1 %v730_v26  ;;  %v725_v32 = vmul.f32 %v722_v31, %v2015_v20  ;;  %v1081_v17 = vld [vmem:[#allocation2 + $0x728] sm:$0xff]  ;;  %v1048_v21 = vld [vmem:[#allocation2 + $0x620] sm:$0xff]  ;;  %v1095_v25 = vld [vmem:[#allocation2 + $0x798] sm:$0xff] }
 0x239   :  { %870 = vmatmul.mubr.f32.vlgmr.msra.gmra.mxu0 %v712_v9  ;;  %945 = vmatmul.mubr.f32.vlgmr.msra.gmra.mxu1 %v724_v28  ;;  %v1098_v9 = vld [vmem:[#allocation2 + $0x7b0] sm:$0xff]  ;;  %v1080_v22 = vld [vmem:[#allocation2 + $0x720] sm:$0xff]  ;;  %v1047_v26 = vld [vmem:[#allocation2 + $0x618] sm:$0xff] }
 0x23a   :  { %874 = vmatprep.mubr.f32.mxu0 %v719_v29  ;;  %949 = vmatprep.mubr.f32.mxu1 %v731_v30  ;;  %v1079_v27 = vld [vmem:[#allocation2 + $0x718] sm:$0xff]  ;;  %v1062_v28 = vld [vmem:[#allocation2 + $0x690] sm:$0xff] }
 0x23b   :  { %1713 = vmatpush3.msra.mxu0 %v1059_v36  ;;  %1751 = vmatpush3.msra.mxu1 %v1091_v37  ;;  %v1094_v29 = vld [vmem:[#allocation2 + $0x790] sm:$0xff]  ;;  %v1077_v36 = vld [vmem:[#allocation2 + $0x708] sm:$0xff]  ;;  %v1060_v37 = vld [vmem:[#allocation2 + $0x680] sm:$0xff] }
 0x23c   :  { %1714 = vmatprep.subr.mxu0 %v1074_v38  ;;  %1752 = vmatprep.subr.mxu1 %v1106_v39  ;;  %v1046_v30 = vld [vmem:[#allocation2 + $0x610] sm:$0xff]  ;;  %v1092_v38 = vld [vmem:[#allocation2 + $0x780] sm:$0xff] }
 0x23d   :  { %875 = vmatmul.mubr.f32.gmra.mxu0 %v713_v10  ;;  %950 = vmatmul.mubr.f32.gmra.mxu1 %v725_v32  ;;  %v1050_v10 = vld [vmem:[#allocation2 + $0x630] sm:$0xff]  ;;  %v1061_v32 = vld [vmem:[#allocation2 + $0x688] sm:$0xff]  ;;  %v1044_v39 = vld [vmem:[#allocation2 + $0x600] sm:$0xff] }
 0x23e   :  { %1715 = vmatpush3.msra.mxu0 %v1058_v40  ;;  %1753 = vmatpush3.msra.mxu1 %v1090_v41  ;;  %v1078_v31 = vld [vmem:[#allocation2 + $0x710] sm:$0xff]  ;;  %v1076_v40 = vld [vmem:[#allocation2 + $0x700] sm:$0xff] }
 0x23f   :  { %1716 = vmatprep.subr.mxu0 %v1073_v42  ;;  %1754 = vmatprep.subr.mxu1 %v1105_v43  ;;  %v1471_v43 = vld [vmem:[%s2222_s2 + $0x2] ss:$0 sm:$0xff] }
 0x240   :  { %1717 = vmatpush3.msra.mxu0 %v1057_v44  ;;  %1755 = vmatpush3.msra.mxu1 %v1089_v45 }
 0x241   :  { %1718 = vmatprep.subr.mxu0 %v1072_v46  ;;  %1756 = vmatprep.subr.mxu1 %v1104_v47 }
 0x242   :  { %1719 = vmatpush3.msra.mxu0 %v1056_v48  ;;  %1757 = vmatpush3.msra.mxu1 %v1088_v49 }
 0x243   :  { %1720 = vmatprep.subr.mxu0 %v1071_v50  ;;  %1758 = vmatprep.subr.mxu1 %v1103_v51 }
 0x244   :  { %1721 = vmatpush3.msra.mxu0 %v1055_v52  ;;  %1759 = vmatpush3.msra.mxu1 %v1087_v53 }
 0x245   :  { %1722 = vmatprep.subr.mxu0 %v1070_v54  ;;  %1760 = vmatprep.subr.mxu1 %v1102_v55 }
 0x246   :  { %1723 = vmatpush3.msra.mxu0 %v1054_v56  ;;  %1761 = vmatpush3.msra.mxu1 %v1086_v57 }
 0x247   :  { %1724 = vmatprep.subr.mxu0 %v1069_v58  ;;  %1762 = vmatprep.subr.mxu1 %v1101_v59 }
 0x248   :  { %1725 = vmatpush3.msra.mxu0 %v1053_v60  ;;  %1763 = vmatpush3.msra.mxu1 %v1085_v61 }
 0x249   :  { %1726 = vmatprep.subr.mxu0 %v1068_v62  ;;  %1764 = vmatprep.subr.mxu1 %v1100_v63 }
 0x24a   :  { %1727 = vmatpush3.msra.mxu0 %v1052_v0  ;;  %1765 = vmatpush3.msra.mxu1 %v1084_v1 }
 0x24b   :  { %1728 = vmatprep.subr.mxu0 %v1067_v2  ;;  %1766 = vmatprep.subr.mxu1 %v1099_v3  ;;  %v1472_v3 = vld [vmem:[%s2225_s5 + $0x2] sm:$0x1] }
 0x24c   :  { %1729 = vmatpush3.msra.mxu0 %v1051_v4  ;;  %1767 = vmatpush3.msra.mxu1 %v1083_v7 }
 0x24d   :  { %1730 = vmatprep.subr.mxu0 %v1066_v8  ;;  %1768 = vmatprep.subr.mxu1 %v1098_v9 }
 0x24e   :  { %1731 = vmatpush3.msra.mxu0 %v1050_v10  ;;  %1769 = vmatpush3.msra.mxu1 %v1082_v12  ;;  %v975_v10 = vmul.f32 2.0, %v1472_v3  ;;  %v976_v12 = vmul.f32 %v1472_v3, %v1472_v3 }
 0x24f   :  { %1732 = vmatprep.subr.mxu0 %v1065_v13  ;;  %1770 = vmatprep.subr.mxu1 %v1097_v14 }
 0x250   :  { %1733 = vmatpush3.msra.mxu0 %v1049_v16  ;;  %1771 = vmatpush3.msra.mxu1 %v1081_v17 }
 0x251   :  { %1734 = vmatprep.subr.mxu0 %v1064_v18  ;;  %1772 = vmatprep.subr.mxu1 %v1096_v19  ;;  %v977_v18 = vsub.f32 %v975_v10, %v976_v12  ;;  %v1344_v10 = vld [vmem:[%s2226_s6 + $0x10] sm:$0xff]  ;;  %v1343_v12 = vld [vmem:[%s2226_s6 + $0x8] sm:$0xff] }
 0x252   :  { %1735 = vmatpush3.msra.mxu0 %v1048_v21  ;;  %1773 = vmatpush3.msra.mxu1 %v1080_v22 }
 0x253   :  { %1736 = vmatprep.subr.mxu0 %v1063_v23  ;;  %1774 = vmatprep.subr.mxu1 %v1095_v25 }
 0x254   :  { %1737 = vmatpush3.msra.mxu0 %v1047_v26  ;;  %1775 = vmatpush3.msra.mxu1 %v1079_v27 }
 0x255   :  { %1738 = vmatprep.subr.mxu0 %v1062_v28  ;;  %1776 = vmatprep.subr.mxu1 %v1094_v29 }
 0x256   :  { %1739 = vmatpush3.msra.mxu0 %v1046_v30  ;;  %1777 = vmatpush3.msra.mxu1 %v1078_v31  ;;  %v1474_v31 = vld [vmem:[%s2223_s3 + $0x2] ss:$0 sm:$0xff] }
 0x257   :  { %1740 = vmatprep.subr.mxu0 %v1061_v32  ;;  %1778 = vmatprep.subr.mxu1 %v1093_v34 }
 0x258   :  { %1741 = vmatpush3.msra.mxu0 %v1045_v35  ;;  %1779 = vmatpush3.msra.mxu1 %v1077_v36 }
 0x259   :  { %1742 = vmatprep.subr.mxu0 %v1060_v37  ;;  %1780 = vmatprep.subr.mxu1 %v1092_v38  ;;  %v1476_v37 = vld [vmem:[%s2224_s4 + $0x2] ss:$0 sm:$0xff] }
 0x25a   :  { %1743 = vmatpush3.msra.mxu0 %v1044_v39  ;;  %1781 = vmatpush3.msra.mxu1 %v1076_v40 }
 0x25b   :  { %1805 = vmatprep.subr.mxu0 %v1907_v5 }
 0x2f9   :  { %v1668_v41 = vpop.f32.mrf.mxu0  ;;  %v1706_v42 = vpop.f32.mrf.mxu1 }
 0x2fb   :  { %v1669_v44 = vpop.f32.mrf.mxu0  ;;  %v1707_v45 = vpop.f32.mrf.mxu1 }
 0x2fc   :  { %v1670_v46 = vadd.f32 %v1669_v44, %v1668_v41  ;;  %v1708_v52 = vadd.f32 %v1707_v45, %v1706_v42 }
 0x2fd   :  { %v1671_v47 = vpop.f32.mrf.mxu0  ;;  %v1709_v48 = vpop.f32.mrf.mxu1 }
 0x2fe   :  { %v872_v49 = vadd.f32 %v1670_v46, %v1471_v43 }
 0x2ff   :  { %v1672_v50 = vpop.f32.mrf.mxu0  ;;  %v1710_v51 = vpop.f32.mrf.mxu1 }
 0x300   :  { %v1673_v53 = vadd.f32 %v1672_v50, %v1671_v47  ;;  %v947_v54 = vadd.f32 %v1708_v52, %v872_v49  ;;  %v1711_v56 = vadd.f32 %v1710_v51, %v1709_v48 }
 0x302   :  { %v877_v55 = vadd.f32 %v1673_v53, %v1471_v43  ;;  %v963_v58 = vmul.f32 %v947_v54, %v947_v54 }
 0x304   :  { %v952_v57 = vadd.f32 %v1711_v56, %v877_v55 }
 0x306   :  { %v955_v59 = vadd.f32 %v952_v57, %v947_v54  ;;  %v964_v60 = vmul.f32 %v952_v57, %v952_v57 }
 0x308   :  { %v956_v61 = vrot.slane %v955_v59, 4  ;;  %v965_v62 = vadd.f32 %v964_v60, %v963_v58 }
 0x30a   :  { %v957_v63 = vadd.f32 %v956_v61, %v955_v59  ;;  %v966_v0 = vrot.slane %v965_v62, 4 }
 0x30c   :  { %v958_v1 = vrot.slane %v957_v63, 2  ;;  %v967_v2 = vadd.f32 %v966_v0, %v965_v62  ;;  %v1352_v0 = vld [vmem:[%s2226_s6 + $0x50] sm:$0xff] }
 0x30e   :  { %v959_v4 = vadd.f32 %v958_v1, %v957_v63  ;;  %v968_v7 = vrot.slane %v967_v2, 2  ;;  %v1353_v63 = vld [vmem:[%s2226_s6 + $0x58] sm:$0xff]  ;;  %v1351_v1 = vld [vmem:[%s2226_s6 + $0x48] sm:$0xff] }
 0x310   :  { %v960_v8 = vrot.slane %v959_v4, 1  ;;  %v969_v9 = vadd.f32 %v968_v7, %v967_v2  ;;  %v1350_v2 = vld [vmem:[%s2226_s6 + $0x40] sm:$0xff]  ;;  %v1347_v7 = vld [vmem:[%s2226_s6 + $0x28] sm:$0xff] }
 0x312   :  { %v961_v13 = vadd.f32 %v960_v8, %v959_v4  ;;  %v970_v14 = vrot.slane %v969_v9, 1  ;;  %v1348_v4 = vld [vmem:[%s2226_s6 + $0x30] sm:$0xff]  ;;  %v1346_v8 = vld [vmem:[%s2226_s6 + $0x20] sm:$0xff] }
 0x314   :  { %v962_v16 = vmul.f32 0.0625, %v961_v13  ;;  %v971_v17 = vadd.f32 %v970_v14, %v969_v9  ;;  %v1345_v9 = vld [vmem:[%s2226_s6 + $0x18] sm:$0xff]  ;;  %v1342_v13 = vld [vmem:[%s2226_s6] sm:$0xff] }
 0x316   :  { %v978_v19 = vmul.f32 %v962_v16, %v962_v16  ;;  %v972_v21 = vmul.f32 0.0625, %v971_v17  ;;  %v986_v27 = vmul.f32 %v1472_v3, %v962_v16  ;;  %v1349_v3 = vld [vmem:[%s2226_s6 + $0x38] sm:$0xff]  ;;  %v1478_v17 = vld [vmem:[%s2222_s2 + $0x3] ss:$0 sm:$0xff] }
 0x318   :  { %v979_v22 = vmul.f32 %v978_v19, %v977_v18  ;;  %v991_v28 = vrot.slane %v986_v27, %v2037_v24 }
 0x31a   :  { %v980_v23 = vsub.f32 %v972_v21, %v979_v22  ;;  %v993_v29 = vsub.f32 %v947_v54, %v991_v28  ;;  %v994_v30 = vsub.f32 %v952_v57, %v991_v28 }
 0x31c   :  { %v981_v25 = vmax.f32 %v980_v23, 0.0  ;;  %v1001_v34 = vmul.f32 %v1474_v31, %v993_v29  ;;  %v1002_v35 = vmul.f32 %v1474_v31, %v994_v30 }
 0x31e   :  { %v982_v26 = vadd.f32 1e-05, %v981_v25 }
 0x320   :  { %1850 = vrsqrt.f32 %v982_v26 }
 0x32d   :  { %v1851_v32 = vpop.eup %1850 }
 0x32e   :  { %v1006_v36 = vrot.slane %v1851_v32, %v2037_v24 }
 0x330   :  { %v1007_v38 = vmul.f32 %v1006_v36, %v1001_v34  ;;  %v1008_v39 = vmul.f32 %v1006_v36, %v1002_v35 }
 0x332   :  { %v1017_v40 = vadd.f32 %v1476_v37, %v1007_v38  ;;  %v1018_v41 = vadd.f32 %v1476_v37, %v1008_v39 }
 0x334   :  { %v1022_v42 = vmul.f32 0.1, %v1018_v41  ;;  %vm1019_vm11 = vcmp.gt.f32.partialorder %v1017_v40, 0.0  ;;  %vm1020_vm12 = vcmp.gt.f32.partialorder %v1018_v41, 0.0  ;;  %v1021_v43 = vmul.f32 0.1, %v1017_v40 }
 0x336   :  { %v1023_v44 = vsel %vm1019_vm11, %v1017_v40, %v1021_v43  ;;  %v1024_v45 = vsel %vm1020_vm12, %v1018_v41, %v1022_v42  ;;  %v1479_v43 = vld [vmem:[%s2225_s5 + $0x3] sm:$0x1] }
 0x337   :  { %v1025_v46 = vrot.slane %v1023_v44, 7  ;;  %v1026_v47 = vrot.slane %v1024_v45, 7  ;;  %v1037_v48 = vrot.slane %v1023_v44, 5  ;;  %v1038_v49 = vrot.slane %v1024_v45, 5 }
 0x338   :  { %v1031_v50 = vrot.slane %v1023_v44, 6  ;;  %v1032_v51 = vrot.slane %v1024_v45, 6 }
 0x339   :  { %v1028_v52 = vsel %vm95_vm1, %v1026_v47, %v1025_v46  ;;  %v1040_v53 = vsel %vm109_vm3, %v1038_v49, %v1037_v48  ;;  %v1027_v54 = vsel %vm95_vm1, %v1025_v46, %v1026_v47  ;;  %v1039_v55 = vsel %vm109_vm3, %v1037_v48, %v1038_v49 }
 0x33a   :  { %v1029_v56 = vmul.f32 %v1028_v52, %v1989_v6  ;;  %v1041_v57 = vmul.f32 %v1040_v53, %v2000_v11  ;;  %v1034_v58 = vsel %vm102_vm5, %v1032_v51, %v1031_v50  ;;  %v1030_v60 = vmul.f32 %v1027_v54, %v2015_v20  ;;  %v1357_v11 = vld [vmem:[%s2226_s6 + $0x78] sm:$0xff] }
 0x33b   :  { %v1035_v59 = vmul.f32 %v1034_v58, %v2007_v15  ;;  %v1042_v61 = vmul.f32 %v1039_v55, %v2015_v20  ;;  %v1033_v62 = vsel %vm102_vm5, %v1031_v50, %v1032_v51  ;;  %v1355_v15 = vld [vmem:[%s2226_s6 + $0x68] sm:$0xff]  ;;  %v1286_v48 = vmul.f32 2.0, %v1479_v43 }
 0x33c   :  { %1180 = vmatprep.mubr.f32.mxu0 %v1029_v56  ;;  %1255 = vmatprep.mubr.f32.mxu1 %v1041_v57  ;;  %v1036_v6 = vmul.f32 %v1033_v62, %v2015_v20  ;;  %v1354_v20 = vld [vmem:[%s2226_s6 + $0x60] sm:$0xff]  ;;  %v1287_v49 = vmul.f32 %v1479_v43, %v1479_v43 }
 0x33d   :  { %1181 = vmatmul.mubr.f32.vlgmr.msra.gmra.mxu0 %v1023_v44  ;;  %1256 = vmatmul.mubr.f32.vlgmr.msra.gmra.mxu1 %v1035_v59 }
 0x33e   :  { %1185 = vmatprep.mubr.f32.mxu0 %v1030_v60  ;;  %1260 = vmatprep.mubr.f32.mxu1 %v1042_v61  ;;  %v1288_v54 = vsub.f32 %v1286_v48, %v1287_v49 }
 0x33f   :  { %1806 = vmatpush3.msra.mxu0 %v1357_v11 }
 0x340   :  { %1807 = vmatprep.subr.mxu0 %v1907_v5 }
 0x341   :  { %1186 = vmatmul.mubr.f32.gmra.mxu0 %v1024_v45  ;;  %1261 = vmatmul.mubr.f32.gmra.mxu1 %v1036_v6 }
 0x342   :  { %1808 = vmatpush3.msra.mxu0 %v1356_v33  ;;  %1837 = vmatprep.mubr.msk.f32.mxu0 %vm1908_vm13, %v1907_v5  ;;  %v1481_v33 = vld [vmem:[%s2223_s3 + $0x3] ss:$0 sm:$0xff] }
 0x343   :  { %1809 = vmatprep.subr.mxu0 %v1907_v5 }
 0x344   :  { %1810 = vmatpush3.msra.mxu0 %v1355_v15 }
 0x345   :  { %1811 = vmatprep.subr.mxu0 %v1907_v5 }
 0x346   :  { %1812 = vmatpush3.msra.mxu0 %v1354_v20 }
 0x347   :  { %1813 = vmatprep.subr.mxu0 %v1907_v5 }
 0x348   :  { %1814 = vmatpush3.msra.mxu0 %v1353_v63 }
 0x349   :  { %1815 = vmatprep.subr.mxu0 %v1907_v5 }
 0x34a   :  { %1816 = vmatpush3.msra.mxu0 %v1352_v0 }
 0x34b   :  { %1817 = vmatprep.subr.mxu0 %v1907_v5 }
 0x34c   :  { %1818 = vmatpush3.msra.mxu0 %v1351_v1  ;;  %v1483_v1 = vld [vmem:[%s2224_s4 + $0x3] ss:$0 sm:$0xff] }
 0x34d   :  { %1819 = vmatprep.subr.mxu0 %v1907_v5 }
 0x34e   :  { %1820 = vmatpush3.msra.mxu0 %v1350_v2 }
 0x34f   :  { %1821 = vmatprep.subr.mxu0 %v1907_v5 }
 0x350   :  { %1822 = vmatpush3.msra.mxu0 %v1349_v3 }
 0x351   :  { %1823 = vmatprep.subr.mxu0 %v1907_v5 }
 0x352   :  { %1824 = vmatpush3.msra.mxu0 %v1348_v4 }
 0x353   :  { %1825 = vmatprep.subr.mxu0 %v1907_v5 }
 0x354   :  { %1826 = vmatpush3.msra.mxu0 %v1347_v7 }
 0x355   :  { %1827 = vmatprep.subr.mxu0 %v1907_v5 }
 0x356   :  { %1828 = vmatpush3.msra.mxu0 %v1346_v8  ;;  %v1858_v8 = vld [vmem:[%s2220_s0] sm:$0xff] }
 0x357   :  { %1829 = vmatprep.subr.mxu0 %v1907_v5 }
 0x358   :  { %1830 = vmatpush3.msra.mxu0 %v1345_v9 }
 0x359   :  { %1831 = vmatprep.subr.mxu0 %v1907_v5 }
 0x35a   :  { %1832 = vmatpush3.msra.mxu0 %v1344_v10  ;;  %v1859_v10 = vld [vmem:[%s2220_s0 + $0x8] sm:$0xff]  ;;  %s1909_s0 = smov [#allocation5]  }
 0x35b   :  { %1833 = vmatprep.subr.mxu0 %v1907_v5  ;;  %s1451_s1 = sshll.u32 %s1909_s0, 4  ;;  %s1452_s1 = int_to_ptr.vmem [resolvable:$true] %s1451_s1 }
 0x35c   :  { %1834 = vmatpush3.msra.mxu0 %v1343_v12  ;;  %s1884_s12 = scalar_lea.vmem %s1452_s1, 32  ;;  %p1885_p6 = scmp.lt.s32.totalorder %s1452_s1, %s1452_s1 }
 0x35d   :  { %1835 = vmatprep.subr.mxu0 %v1907_v5 }
 0x35e   :  { %1836 = vmatpush3.msra.mxu0 %v1342_v13 }
 0x3fd   :  { %v1744_v14 = vpop.f32.mrf.mxu0  ;;  %v1782_v16 = vpop.f32.mrf.mxu1 }
 0x3ff   :  { %v1745_v18 = vpop.f32.mrf.mxu0  ;;  %v1783_v19 = vpop.f32.mrf.mxu1 }
 0x400   :  { %v1746_v21 = vadd.f32 %v1745_v18, %v1744_v14  ;;  %v1784_v28 = vadd.f32 %v1783_v19, %v1782_v16 }
 0x401   :  { %v1747_v22 = vpop.f32.mrf.mxu0  ;;  %v1785_v23 = vpop.f32.mrf.mxu1 }
 0x402   :  { %v1183_v25 = vadd.f32 %v1746_v21, %v1478_v17 }
 0x403   :  { %v1748_v26 = vpop.f32.mrf.mxu0  ;;  %v1786_v27 = vpop.f32.mrf.mxu1 }
 0x404   :  { %v1749_v29 = vadd.f32 %v1748_v26, %v1747_v22  ;;  %v1258_v30 = vadd.f32 %v1784_v28, %v1183_v25  ;;  %v1787_v5 = vadd.f32 %v1786_v27, %v1785_v23  ;;  %v1358_v25 = vld [vmem:[%s2227_s7] sm:$0x1]  ;;  %s1880_s7 = scalar_lea.vmem %s1452_s1, 16 }
 0x405   :  { %p1881_p5 = scmp.ne.s32.totalorder %s1452_s1, %s1880_s7  ;;  %p1886_p7 = scmp.lt.s32.totalorder %s1884_s12, %s1880_s7 }
 0x406   :  { %v1188_v31 = vadd.f32 %v1749_v29, %v1478_v17  ;;  %v1274_v34 = vmul.f32 %v1258_v30, %v1258_v30 }
 0x407   :  { %p1887_p8 = por %p1886_p7, %p1885_p6 }
 0x408   :  { %v1263_v32 = vadd.f32 %v1787_v5, %v1188_v31 }
 0x409   :  { %p1888_p9 = pnand %p1887_p8, %p1881_p5 }
 0x40a   :  { %v1266_v35 = vadd.f32 %v1263_v32, %v1258_v30  ;;  %v1275_v36 = vmul.f32 %v1263_v32, %v1263_v32 }
 0x40c   :  { %v1267_v37 = vrot.slane %v1266_v35, 4  ;;  %v1276_v38 = vadd.f32 %v1275_v36, %v1274_v34 }
 0x40e   :  { %v1268_v39 = vadd.f32 %v1267_v37, %v1266_v35  ;;  %v1277_v40 = vrot.slane %v1276_v38, 4 }
 0x410   :  { %v1269_v41 = vrot.slane %v1268_v39, 2  ;;  %v1278_v42 = vadd.f32 %v1277_v40, %v1276_v38 }
 0x412   :  { %v1270_v44 = vadd.f32 %v1269_v41, %v1268_v39  ;;  %v1279_v45 = vrot.slane %v1278_v42, 2 }
 0x414   :  { %v1271_v46 = vrot.slane %v1270_v44, 1  ;;  %v1280_v47 = vadd.f32 %v1279_v45, %v1278_v42 }
 0x416   :  { %v1272_v50 = vadd.f32 %v1271_v46, %v1270_v44  ;;  %v1281_v51 = vrot.slane %v1280_v47, 1 }
 0x418   :  { %v1273_v52 = vmul.f32 0.0625, %v1272_v50  ;;  %v1282_v53 = vadd.f32 %v1281_v51, %v1280_v47 }
 0x41a   :  { %v1289_v55 = vmul.f32 %v1273_v52, %v1273_v52  ;;  %v1283_v56 = vmul.f32 0.0625, %v1282_v53  ;;  %v1297_v61 = vmul.f32 %v1479_v43, %v1273_v52 }
 0x41c   :  { %v1290_v57 = vmul.f32 %v1289_v55, %v1288_v54  ;;  %v1302_v62 = vrot.slane %v1297_v61, %v2037_v24 }
 0x41e   :  { %v1291_v58 = vsub.f32 %v1283_v56, %v1290_v57  ;;  %v1304_v6 = vsub.f32 %v1258_v30, %v1302_v62  ;;  %v1305_v11 = vsub.f32 %v1263_v32, %v1302_v62 }
 0x420   :  { %v1292_v59 = vmax.f32 %v1291_v58, 0.0  ;;  %v1312_v20 = vmul.f32 %v1481_v33, %v1304_v6  ;;  %v1313_v63 = vmul.f32 %v1481_v33, %v1305_v11 }
 0x422   :  { %v1293_v60 = vadd.f32 1e-05, %v1292_v59 }
 0x424   :  { %1852 = vrsqrt.f32 %v1293_v60 }
 0x431   :  { %v1853_v15 = vpop.eup %1852 }
 0x432   :  { %v1317_v0 = vrot.slane %v1853_v15, %v2037_v24 }
 0x434   :  { %v1318_v2 = vmul.f32 %v1317_v0, %v1312_v20  ;;  %v1319_v3 = vmul.f32 %v1317_v0, %v1313_v63 }
 0x436   :  { %v1328_v4 = vadd.f32 %v1483_v1, %v1318_v2  ;;  %v1329_v7 = vadd.f32 %v1483_v1, %v1319_v3 }
 0x438   :  { %v1330_v9 = vadd.f32 %v1858_v8, %v1328_v4  ;;  %v1331_v12 = vadd.f32 %v1859_v10, %v1329_v7 }
 0x43a   :  { %v1332_v13 = vmax.f32 %v1330_v9, 0.0  ;;  %v1333_v24 = vmax.f32 %v1331_v12, 0.0 }
 0x43c   :  { %v1334_v14 = vadd.f32 %v1333_v24, %v1332_v13 }
 0x43e   :  { %v1335_v16 = vrot.slane %v1334_v14, 4 }
 0x440   :  { %v1336_v17 = vadd.f32 %v1335_v16, %v1334_v14 }
 0x442   :  { %v1337_v18 = vrot.slane %v1336_v17, 2 }
 0x444   :  { %v1338_v19 = vadd.f32 %v1337_v18, %v1336_v17 }
 0x446   :  { %v1339_v21 = vrot.slane %v1338_v19, 1 }
 0x448   :  { %v1340_v22 = vadd.f32 %v1339_v21, %v1338_v19 }
 0x44a   :  { %v1341_v23 = vmul.f32 0.0625, %v1340_v22 }
 0x44c   :  { %1838 = vmatmul.mubr.f32.vlgmr.msra.gmra.mxu0 %v1341_v23 }
 0x50c   :  { %v1425_v26 = vpop.f32.mrf.mxu0 }
 0x50d   :  { %v1426_v27 = vadd.f32 %v1425_v26, %v1358_v25 }
 0x50e   :  { %v1839_v28 = vpop.f32.mrf.mxu0 }
 0x50f   :  { %v1430_v29 = vmin.f32 %v1426_v27, 20.0  ;;  %vm1429_vm0 = vcmp.gt.f32.partialorder %v1426_v27, 20.0 }
 0x511   :  { %v1431_v30 = vmul.f32 1.442695, %v1430_v29 }
 0x513   :  { %1854 = vpow2.f32 %v1431_v30 }
 0x520   :  { %v1855_v31 = vpop.eup %1854 }
 0x521   :  { %v1433_v5 = vadd.f32 1.0, %v1855_v31  ;;  %v1436_v32 = vmul.f32 -0.5, %v1855_v31  ;;  %v1439_v35 = vand.u32 2147483647, %v1855_v31 }
 0x523   :  { %1856 = vlog2.f32 %v1433_v5  ;;  %v1437_v34 = vadd.f32 1.0, %v1436_v32  ;;  %vm1440_vm14 = vcmp.lt.f32.partialorder %v1439_v35, 0.0004427343 }
 0x525   :  { %v1438_v38 = vmul.f32 %v1855_v31, %v1437_v34 }
 0x530   :  { %v1857_v36 = vpop.eup %1856 }
 0x531   :  { %v1435_v37 = vmul.f32 0.6931472, %v1857_v36 }
 0x533   :  { %v1441_v39 = vsel %vm1440_vm14, %v1438_v38, %v1435_v37 }
 0x534   :  { %v1442_v40 = vsel %vm1429_vm0, %v1426_v27, %v1441_v39 }
 0x535   :  { %1444 = vst.msk [vmem:[#allocation5] sm:$0x1] %vm1443_vm15, %v1442_v40 }
 0x536   :  { %1891 = shalt.err (!%p1888_p9)
}
 0x537   :  { %1454 = dma.vmem_to_hbm [thread:$0]  %s1452_s1, 16, %s2228_s8, [#allocation4]  }
 0x538   :  { %1902 = dma.done.wait [#allocation4], 16  }
 0x539   :  { %1903 = vsyncadd [#allocation4], 4294967280 }
 0x53a   :  { %1458 = vsyncpa [#allocation3], 1 }
 0x53b   :  { %1459 = vsyncpa [#allocation4], 1 }

</bundles_post_ra>
